<compile_context>
chip_gen: v6e
topology: v6e:2x2x1
jax: 0.10.0
libtpu: 0.0.40
codegen_flags: <defaults>
</compile_context>

<pallas_src>
import functools
import math

import jax
import jax.numpy as jnp
from jax.experimental import pallas as pl
from jax.experimental.pallas import tpu as pltpu


def _cnnet_kernel(x_ref, w1_ref, w2_ref, w3_ref, wp_ref, vec_ref, bp_ref,
                  out_ref, scr_ref, hd_ref, *, l3):
    """One grid step processes TB batch samples.

    x_ref  : (TB*SEG1, ks*C_in) bf16  pre-built, per-sample-padded layer-1 im2col
    w1_ref : (ks*C_in, H)       bf16  fused layer-1 taps
    w2_ref : (ks, H, H)         bf16  layer-2 taps, split per tap
    w3_ref : (ks, H, H)         bf16
    wp_ref : (H, O)             bf16  1x1 conv_predict
    vec_ref: (9, H)             f32   rows: b1,s1,t1, b2,s2,t2, b3,s3,t3
    bp_ref : (1, O)             f32   conv_predict bias (added after length-max)
    out_ref: (TB, O)            f32
    scr_ref: (TB*SEG1, H)       f32   scratch for pooling / shifted conv reads
    hd_ref : (TB*SEG3, O)       f32   scratch for the per-sample length-max tree
    """
    tb, o = out_ref.shape
    r1 = x_ref.shape[0]
    ks = w2_ref.shape[0]
    seg1 = r1 // tb
    r2, r3 = r1 // 2, r1 // 4
    seg3 = seg1 // 4

    def relu_bn(y, row):
        # conv bias -> ReLU -> folded eval-mode BatchNorm (all f32 elementwise).
        y = jnp.maximum(y + vec_ref[row:row + 1, :], 0.0)
        return y * vec_ref[row + 1:row + 2, :] + vec_ref[row + 2:row + 3, :]

    def pool_halve(y, rows):
        # MaxPool1d(kernel=2, stride=2): store once, read even/odd rows with a
        # sublane-strided ds (no per-step iota masks, no selection matmuls).
        scr_ref[0:rows, :] = y
        half = rows // 2
        even = scr_ref[pl.ds(0, half, stride=2), :]
        odd = scr_ref[pl.ds(1, half, stride=2), :]
        return jnp.maximum(even, odd)

    def conv_accum(p, rows, w_ref):
        # y[r] = sum_k p[r+k] @ W[k].  Shifted views come from scratch; rows just
        # past `rows` hold stale-but-finite data and only feed padded (invalid)
        # output positions, which are never read downstream.
        scr_ref[0:rows, :] = p
        acc = jnp.dot(p.astype(jnp.bfloat16), w_ref[0],
                      preferred_element_type=jnp.float32)
        for k in range(1, ks):
            shifted = scr_ref[pl.ds(k, rows), :].astype(jnp.bfloat16)
            acc = acc + jnp.dot(shifted, w_ref[k],
                                preferred_element_type=jnp.float32)
        return acc

    # ---- layer 1: one (TB*SEG1, ks*C_in) @ (ks*C_in, H) matmul on im2col ----
    y = jnp.dot(x_ref[...], w1_ref[...], preferred_element_type=jnp.float32)
    y = relu_bn(y, 0)
    p = pool_halve(y, r1)                         # (R2, H)

    # ---- layer 2 ----
    y = relu_bn(conv_accum(p, r2, w2_ref), 3)     # (R2, H)
    p = pool_halve(y, r2)                         # (R3, H)

    # ---- layer 3 ----
    y = relu_bn(conv_accum(p, r3, w3_ref), 6)     # (R3, H)

    # ---- conv_predict (1x1) + per-sample max over the l3 valid positions ----
    pred = jnp.dot(y.astype(jnp.bfloat16), wp_ref[...],
                   preferred_element_type=jnp.float32)            # (R3, O)
    ridx = jax.lax.broadcasted_iota(jnp.int32, (r3, 1), 0)
    pred = jnp.where(ridx % seg3 < l3, pred, -jnp.inf)            # mask pad rows
    rows = r3
    while rows > tb:            # log2(SEG3) pairwise-max rounds (SEG3 = 2^k)
        hd_ref[0:rows, :] = pred
        rows //= 2
        pred = jnp.maximum(hd_ref[pl.ds(0, rows, stride=2), :],
                           hd_ref[pl.ds(1, rows, stride=2), :])
    out_ref[...] = (pred + bp_ref[...]).astype(out_ref.dtype)


def cnnet_forward(x, params, *, ks, block_b=8):
    """x: (B, L, nf_in) float32 -- same layout the PyTorch module receives."""
    B, L, c_in = x.shape
    h = params["w1"].shape[1]
    o = params["wp"].shape[1]
    eps = 1e-5

    # PyTorch length trace (valid lengths per stage).
    l1 = L - ks + 1
    p1 = l1 // 2
    l2 = p1 - ks + 1
    p2 = l2 // 2
    l3 = p2 - ks + 1
    assert l3 >= 1, "input too short for three conv/pool stages"

    # Per-sample padded segment after conv1: power of two (>=32) so the pooling
    # and final-max strided trees stay aligned across the flattened batch.
    seg1 = max(32, 1 << math.ceil(math.log2(max(l1, 1))))
    seg3 = seg1 // 4
    assert seg1 >= l1 and seg1 % 32 == 0 and (seg3 & (seg3 - 1)) == 0

    tb = int(block_b)
    bp_pad = pl.cdiv(B, tb) * tb                  # pad batch to a tile multiple

    # Layer-1 im2col, per-sample padded to seg1 rows, flattened sample-major.
    cols = jnp.concatenate([x[:, k:k + l1, :] for k in range(ks)], axis=-1)
    cols = jnp.pad(cols, ((0, bp_pad - B), (0, seg1 - l1), (0, 0)))
    x2d = cols.reshape(bp_pad * seg1, ks * c_in).astype(jnp.bfloat16)

    # Fold eval-mode BatchNorm into per-channel scale/shift; pack with biases.
    def fold(g, beta, mean, var):
        s = g / jnp.sqrt(var + eps)
        return s, beta - mean * s

    s1, t1 = fold(params["bn1_g"], params["bn1_b"], params["bn1_m"], params["bn1_v"])
    s2, t2 = fold(params["bn2_g"], params["bn2_b"], params["bn2_m"], params["bn2_v"])
    s3, t3 = fold(params["bn3_g"], params["bn3_b"], params["bn3_m"], params["bn3_v"])
    vec = jnp.stack([params["b1"].reshape(-1), s1, t1,
                     params["b2"].reshape(-1), s2, t2,
                     params["b3"].reshape(-1), s3, t3], axis=0).astype(jnp.float32)

    # bf16 matmul operands (halves VMEM/DMA; native MXU path on v6e/v7x).
    w1 = params["w1"].astype(jnp.bfloat16)                     # (ks*c_in, h)
    w2 = params["w2"].reshape(ks, h, h).astype(jnp.bfloat16)   # (ks, h, h)
    w3 = params["w3"].reshape(ks, h, h).astype(jnp.bfloat16)
    wp = params["wp"].astype(jnp.bfloat16)                     # (h, o)
    bp = params["bp"].astype(jnp.float32)                      # (1, o)

    kernel = functools.partial(_cnnet_kernel, l3=l3)
    out = pl.pallas_call(
        kernel,
        out_shape=jax.ShapeDtypeStruct((bp_pad, o), jnp.float32),
        grid_spec=pltpu.PrefetchScalarGridSpec(
            num_scalar_prefetch=0,
            grid=(bp_pad // tb,),
            in_specs=[
                pl.BlockSpec((tb * seg1, ks * c_in), lambda i: (i, 0)),
                pl.BlockSpec(w1.shape, lambda i: (0, 0)),       # resident weights
                pl.BlockSpec(w2.shape, lambda i: (0, 0, 0)),
                pl.BlockSpec(w3.shape, lambda i: (0, 0, 0)),
                pl.BlockSpec(wp.shape, lambda i: (0, 0)),
                pl.BlockSpec(vec.shape, lambda i: (0, 0)),
                pl.BlockSpec(bp.shape, lambda i: (0, 0)),
            ],
            out_specs=pl.BlockSpec((tb, o), lambda i: (i, 0)),
            scratch_shapes=[
                pltpu.VMEM((tb * seg1, h), jnp.float32),
                pltpu.VMEM((tb * seg3, o), jnp.float32),
            ],
        ),
        compiler_params=pltpu.CompilerParams(
            dimension_semantics=("parallel",)),
    )(x2d, w1, w2, w3, wp, vec, bp)
    return out[:B]


def init_params(key, ks, nf_in, nf_hidden, nf_out):
    """Deterministic init; conv weights stored pre-fused as (ks*C_in, C_out)."""
    keys = jax.random.split(key, 20)
    u = lambda k, shape, b: jax.random.uniform(k, shape, jnp.float32, -b, b)
    k1 = 1.0 / math.sqrt(nf_in * ks)
    k2 = 1.0 / math.sqrt(nf_hidden * ks)
    kp = 1.0 / math.sqrt(nf_hidden)
    p = {
        "w1": u(keys[0], (ks * nf_in, nf_hidden), k1),
        "b1": u(keys[1], (1, nf_hidden), k1),
        "w2": u(keys[2], (ks * nf_hidden, nf_hidden), k2),
        "b2": u(keys[3], (1, nf_hidden), k2),
        "w3": u(keys[4], (ks * nf_hidden, nf_hidden), k2),
        "b3": u(keys[5], (1, nf_hidden), k2),
        "wp": u(keys[6], (nf_hidden, nf_out), kp),
        "bp": u(keys[7], (1, nf_out), kp),
    }
    # Non-trivial eval-mode BatchNorm statistics/affine so the check is meaningful.
    for i, base in zip(range(3), (8, 11, 14)):
        p[f"bn{i+1}_g"] = jax.random.uniform(keys[base + 0], (nf_hidden,), jnp.float32, 0.5, 1.5)
        p[f"bn{i+1}_b"] = jax.random.uniform(keys[base + 1], (nf_hidden,), jnp.float32, -0.5, 0.5)
        p[f"bn{i+1}_m"] = jax.random.uniform(keys[base + 2], (nf_hidden,), jnp.float32, -0.5, 0.5)
        p[f"bn{i+1}_v"] = jax.random.uniform(keys[17 + i], (nf_hidden,), jnp.float32, 0.5, 1.5)
    return p


def cnnet_reference(x, params, ks):
    """Pure-JAX replica of the PyTorch forward (eval mode), from the same params."""
    eps = 1e-5

    def conv1d(h, w_fused, b):  # h: (B, C, L) channels-first, like PyTorch Conv1d
        c_in, c_out = h.shape[1], w_fused.shape[1]
        w_oik = jnp.transpose(w_fused.reshape(ks, c_in, c_out), (2, 1, 0))  # (O, I, ks)
        y = jax.lax.conv_general_dilated(
            h, w_oik, window_strides=(1,), padding="VALID",
            dimension_numbers=("NCH", "OIH", "NCH"),
            precision=jax.lax.Precision.HIGHEST)
        return y + b.reshape(1, -1, 1)

    def bn(h, g, beta, m, v):
        return ((h - m[None, :, None]) / jnp.sqrt(v[None, :, None] + eps)
                * g[None, :, None] + beta[None, :, None])

    def pool(h):
        lp = h.shape[2] // 2
        return jnp.max(h[:, :, :2 * lp].reshape(h.shape[0], h.shape[1], lp, 2), axis=3)

    h = jnp.transpose(x, (0, 2, 1))                     # inputs.transpose(1, 2)
    h = jax.nn.relu(conv1d(h, params["w1"], params["b1"]))
    h = bn(h, params["bn1_g"], params["bn1_b"], params["bn1_m"], params["bn1_v"])
    h = pool(h)                                          # dropout = identity (eval)
    h = jax.nn.relu(conv1d(h, params["w2"], params["b2"]))
    h = bn(h, params["bn2_g"], params["bn2_b"], params["bn2_m"], params["bn2_v"])
    h = pool(h)
    h = jax.nn.relu(conv1d(h, params["w3"], params["b3"]))
    h = bn(h, params["bn3_g"], params["bn3_b"], params["bn3_m"], params["bn3_v"])
    pred = jnp.einsum("bcl,co->bol", h, params["wp"],
                      precision=jax.lax.Precision.HIGHEST) + params["bp"].reshape(1, -1, 1)
    return jnp.max(pred, axis=2)                        # pred.max(dim=2)[0]


if __name__ == "__main__":
    B, L, KS = 16, 32, 3
    NF_IN, NF_HIDDEN, NF_OUT = 4, 32, 8
    TB = 8   # batch tile: grid=(2,) -> >=2 steps so v7x's two TCs both get work
    # Length trace: 32 -conv-> 30 -pool-> 15 -conv-> 13 -pool-> 6 -conv-> 4 -max-> 1

    key = jax.random.PRNGKey(0)
    kx, kp = jax.random.split(key)
    x = jax.random.normal(kx, (B, L, NF_IN), dtype=jnp.float32)
    params = init_params(kp, KS, NF_IN, NF_HIDDEN, NF_OUT)

    out = cnnet_forward(x, params, ks=KS, block_b=TB)
    out = jax.block_until_ready(out)

    ref = cnnet_reference(x, params, KS)
    assert out.shape == (B, NF_OUT)
    # bf16 MXU operands vs. float32 HIGHEST-precision reference -> loosened tolerance.
    assert jnp.allclose(out, ref, atol=5e-2, rtol=5e-2), "mismatch vs reference"

    print("KERNEL_OK")
</pallas_src>

<mosaic_0001>
module attributes {stable_mosaic.version = 11 : i64} {
  func.func @_cnnet_kernel(%arg0: i32, %arg1: memref<256x12xbf16, #tpu.memory_space<vmem>>, %arg2: memref<12x32xbf16, #tpu.memory_space<vmem>>, %arg3: memref<3x32x32xbf16, #tpu.memory_space<vmem>>, %arg4: memref<3x32x32xbf16, #tpu.memory_space<vmem>>, %arg5: memref<32x8xbf16, #tpu.memory_space<vmem>>, %arg6: memref<9x32xf32, #tpu.memory_space<vmem>>, %arg7: memref<1x8xf32, #tpu.memory_space<vmem>>, %arg8: memref<8x8xf32, #tpu.memory_space<vmem>>, %arg9: memref<256x32xf32, #tpu.memory_space<vmem>>, %arg10: memref<64x8xf32, #tpu.memory_space<vmem>>) attributes {dimension_semantics = [#tpu.dimension_semantics<parallel>], iteration_bounds = array<i64: 2>, scalar_prefetch = 0 : i64, scratch_operands = 2 : i64, tpu.core_type = #tpu.core_type<tc>, window_params = [{transform_indices = @transform_0, window_bounds = array<i64: 256, 12>}, {pipeline_mode = #tpu.pipeline_mode<synchronous>, transform_indices = @transform_1, window_bounds = array<i64: 12, 32>}, {pipeline_mode = #tpu.pipeline_mode<synchronous>, transform_indices = @transform_2, window_bounds = array<i64: 3, 32, 32>}, {pipeline_mode = #tpu.pipeline_mode<synchronous>, transform_indices = @transform_3, window_bounds = array<i64: 3, 32, 32>}, {pipeline_mode = #tpu.pipeline_mode<synchronous>, transform_indices = @transform_4, window_bounds = array<i64: 32, 8>}, {pipeline_mode = #tpu.pipeline_mode<synchronous>, transform_indices = @transform_5, window_bounds = array<i64: 9, 32>}, {pipeline_mode = #tpu.pipeline_mode<synchronous>, transform_indices = @transform_6, window_bounds = array<i64: 1, 8>}, {transform_indices = @transform_7, window_bounds = array<i64: 8, 8>}]} {
    %c0 = arith.constant 0 : index
    %c0_0 = arith.constant 0 : index
    %0 = vector.load %arg1[%c0, %c0_0] : memref<256x12xbf16, #tpu.memory_space<vmem>>, vector<256x12xbf16>
    %c0_1 = arith.constant 0 : index
    %c0_2 = arith.constant 0 : index
    %1 = vector.load %arg2[%c0_1, %c0_2] : memref<12x32xbf16, #tpu.memory_space<vmem>>, vector<12x32xbf16>
    %cst = arith.constant dense<0.000000e+00> : vector<256x32xf32>
    %2 = tpu.matmul %0, %1, %cst {dimension_numbers = #tpu.dot_dimension_numbers<[1], [0], [0], [1], [0, 0, 1, 1], [], []>} : vector<256x12xbf16>, vector<12x32xbf16>, vector<256x32xf32> -> vector<256x32xf32>
    %c0_3 = arith.constant 0 : index
    %c0_4 = arith.constant 0 : index
    %3 = vector.load %arg6[%c0_3, %c0_4] : memref<9x32xf32, #tpu.memory_space<vmem>>, vector<1x32xf32>
    %4 = vector.broadcast %3 : vector<1x32xf32> to vector<256x32xf32>
    %5 = arith.addf %2, %4 : vector<256x32xf32>
    %cst_5 = arith.constant 0.000000e+00 : f32
    %6 = vector.broadcast %cst_5 : f32 to vector<256x32xf32>
    %7 = arith.maximumf %5, %6 : vector<256x32xf32>
    %c1 = arith.constant 1 : index
    %c0_6 = arith.constant 0 : index
    %8 = vector.load %arg6[%c1, %c0_6] : memref<9x32xf32, #tpu.memory_space<vmem>>, vector<1x32xf32>
    %9 = vector.broadcast %8 : vector<1x32xf32> to vector<256x32xf32>
    %10 = arith.mulf %7, %9 : vector<256x32xf32>
    %c2 = arith.constant 2 : index
    %c0_7 = arith.constant 0 : index
    %11 = vector.load %arg6[%c2, %c0_7] : memref<9x32xf32, #tpu.memory_space<vmem>>, vector<1x32xf32>
    %12 = vector.broadcast %11 : vector<1x32xf32> to vector<256x32xf32>
    %13 = arith.addf %10, %12 : vector<256x32xf32>
    %c0_8 = arith.constant 0 : index
    %c0_9 = arith.constant 0 : index
    %14 = vector.load %arg9[%c0_8, %c0_9] : memref<256x32xf32, #tpu.memory_space<vmem>>, vector<256x32xf32>
    tpu.vector_store %arg9[%c0_8, %c0_9], %13 {strides = array<i32>} : memref<256x32xf32, #tpu.memory_space<vmem>>, vector<256x32xf32>,
    %c0_10 = arith.constant 0 : index
    %c0_11 = arith.constant 0 : index
    %15 = tpu.strided_load %arg9[%c0_10, %c0_11] {strides = array<i32: 2, 1>} : memref<256x32xf32, #tpu.memory_space<vmem>>, vector<128x32xf32>
    %c1_12 = arith.constant 1 : index
    %c0_13 = arith.constant 0 : index
    %16 = tpu.strided_load %arg9[%c1_12, %c0_13] {strides = array<i32: 2, 1>} : memref<256x32xf32, #tpu.memory_space<vmem>>, vector<128x32xf32>
    %17 = arith.maximumf %15, %16 : vector<128x32xf32>
    %c0_14 = arith.constant 0 : index
    %c0_15 = arith.constant 0 : index
    %18 = vector.load %arg9[%c0_14, %c0_15] : memref<256x32xf32, #tpu.memory_space<vmem>>, vector<128x32xf32>
    tpu.vector_store %arg9[%c0_14, %c0_15], %17 {strides = array<i32>} : memref<256x32xf32, #tpu.memory_space<vmem>>, vector<128x32xf32>,
    %19 = arith.truncf %17 : vector<128x32xf32> to vector<128x32xbf16>
    %c0_16 = arith.constant 0 : index
    %c0_17 = arith.constant 0 : index
    %c0_18 = arith.constant 0 : index
    %20 = vector.load %arg3[%c0_16, %c0_17, %c0_18] : memref<3x32x32xbf16, #tpu.memory_space<vmem>>, vector<1x32x32xbf16>
    %21 = vector.shape_cast %20 : vector<1x32x32xbf16> to vector<32x32xbf16>
    %cst_19 = arith.constant dense<0.000000e+00> : vector<128x32xf32>
    %22 = tpu.matmul %19, %21, %cst_19 {dimension_numbers = #tpu.dot_dimension_numbers<[1], [0], [0], [1], [0, 0, 1, 1], [], []>} : vector<128x32xbf16>, vector<32x32xbf16>, vector<128x32xf32> -> vector<128x32xf32>
    %c1_20 = arith.constant 1 : index
    %c0_21 = arith.constant 0 : index
    %23 = vector.load %arg9[%c1_20, %c0_21] : memref<256x32xf32, #tpu.memory_space<vmem>>, vector<128x32xf32>
    %24 = arith.truncf %23 : vector<128x32xf32> to vector<128x32xbf16>
    %c1_22 = arith.constant 1 : index
    %c0_23 = arith.constant 0 : index
    %c0_24 = arith.constant 0 : index
    %25 = vector.load %arg3[%c1_22, %c0_23, %c0_24] : memref<3x32x32xbf16, #tpu.memory_space<vmem>>, vector<1x32x32xbf16>
    %26 = vector.shape_cast %25 : vector<1x32x32xbf16> to vector<32x32xbf16>
    %cst_25 = arith.constant dense<0.000000e+00> : vector<128x32xf32>
    %27 = tpu.matmul %24, %26, %cst_25 {dimension_numbers = #tpu.dot_dimension_numbers<[1], [0], [0], [1], [0, 0, 1, 1], [], []>} : vector<128x32xbf16>, vector<32x32xbf16>, vector<128x32xf32> -> vector<128x32xf32>
    %28 = arith.addf %22, %27 : vector<128x32xf32>
    %c2_26 = arith.constant 2 : index
    %c0_27 = arith.constant 0 : index
    %29 = vector.load %arg9[%c2_26, %c0_27] : memref<256x32xf32, #tpu.memory_space<vmem>>, vector<128x32xf32>
    %30 = arith.truncf %29 : vector<128x32xf32> to vector<128x32xbf16>
    %c2_28 = arith.constant 2 : index
    %c0_29 = arith.constant 0 : index
    %c0_30 = arith.constant 0 : index
    %31 = vector.load %arg3[%c2_28, %c0_29, %c0_30] : memref<3x32x32xbf16, #tpu.memory_space<vmem>>, vector<1x32x32xbf16>
    %32 = vector.shape_cast %31 : vector<1x32x32xbf16> to vector<32x32xbf16>
    %cst_31 = arith.constant dense<0.000000e+00> : vector<128x32xf32>
    %33 = tpu.matmul %30, %32, %cst_31 {dimension_numbers = #tpu.dot_dimension_numbers<[1], [0], [0], [1], [0, 0, 1, 1], [], []>} : vector<128x32xbf16>, vector<32x32xbf16>, vector<128x32xf32> -> vector<128x32xf32>
    %34 = arith.addf %28, %33 : vector<128x32xf32>
    %c3 = arith.constant 3 : index
    %c0_32 = arith.constant 0 : index
    %35 = vector.load %arg6[%c3, %c0_32] : memref<9x32xf32, #tpu.memory_space<vmem>>, vector<1x32xf32>
    %36 = vector.broadcast %35 : vector<1x32xf32> to vector<128x32xf32>
    %37 = arith.addf %34, %36 : vector<128x32xf32>
    %cst_33 = arith.constant 0.000000e+00 : f32
    %38 = vector.broadcast %cst_33 : f32 to vector<128x32xf32>
    %39 = arith.maximumf %37, %38 : vector<128x32xf32>
    %c4 = arith.constant 4 : index
    %c0_34 = arith.constant 0 : index
    %40 = vector.load %arg6[%c4, %c0_34] : memref<9x32xf32, #tpu.memory_space<vmem>>, vector<1x32xf32>
    %41 = vector.broadcast %40 : vector<1x32xf32> to vector<128x32xf32>
    %42 = arith.mulf %39, %41 : vector<128x32xf32>
    %c5 = arith.constant 5 : index
    %c0_35 = arith.constant 0 : index
    %43 = vector.load %arg6[%c5, %c0_35] : memref<9x32xf32, #tpu.memory_space<vmem>>, vector<1x32xf32>
    %44 = vector.broadcast %43 : vector<1x32xf32> to vector<128x32xf32>
    %45 = arith.addf %42, %44 : vector<128x32xf32>
    %c0_36 = arith.constant 0 : index
    %c0_37 = arith.constant 0 : index
    %46 = vector.load %arg9[%c0_36, %c0_37] : memref<256x32xf32, #tpu.memory_space<vmem>>, vector<128x32xf32>
    tpu.vector_store %arg9[%c0_36, %c0_37], %45 {strides = array<i32>} : memref<256x32xf32, #tpu.memory_space<vmem>>, vector<128x32xf32>,
    %c0_38 = arith.constant 0 : index
    %c0_39 = arith.constant 0 : index
    %47 = tpu.strided_load %arg9[%c0_38, %c0_39] {strides = array<i32: 2, 1>} : memref<256x32xf32, #tpu.memory_space<vmem>>, vector<64x32xf32>
    %c1_40 = arith.constant 1 : index
    %c0_41 = arith.constant 0 : index
    %48 = tpu.strided_load %arg9[%c1_40, %c0_41] {strides = array<i32: 2, 1>} : memref<256x32xf32, #tpu.memory_space<vmem>>, vector<64x32xf32>
    %49 = arith.maximumf %47, %48 : vector<64x32xf32>
    %c0_42 = arith.constant 0 : index
    %c0_43 = arith.constant 0 : index
    %50 = vector.load %arg9[%c0_42, %c0_43] : memref<256x32xf32, #tpu.memory_space<vmem>>, vector<64x32xf32>
    tpu.vector_store %arg9[%c0_42, %c0_43], %49 {strides = array<i32>} : memref<256x32xf32, #tpu.memory_space<vmem>>, vector<64x32xf32>,
    %51 = arith.truncf %49 : vector<64x32xf32> to vector<64x32xbf16>
    %c0_44 = arith.constant 0 : index
    %c0_45 = arith.constant 0 : index
    %c0_46 = arith.constant 0 : index
    %52 = vector.load %arg4[%c0_44, %c0_45, %c0_46] : memref<3x32x32xbf16, #tpu.memory_space<vmem>>, vector<1x32x32xbf16>
    %53 = vector.shape_cast %52 : vector<1x32x32xbf16> to vector<32x32xbf16>
    %cst_47 = arith.constant dense<0.000000e+00> : vector<64x32xf32>
    %54 = tpu.matmul %51, %53, %cst_47 {dimension_numbers = #tpu.dot_dimension_numbers<[1], [0], [0], [1], [0, 0, 1, 1], [], []>} : vector<64x32xbf16>, vector<32x32xbf16>, vector<64x32xf32> -> vector<64x32xf32>
    %c1_48 = arith.constant 1 : index
    %c0_49 = arith.constant 0 : index
    %55 = vector.load %arg9[%c1_48, %c0_49] : memref<256x32xf32, #tpu.memory_space<vmem>>, vector<64x32xf32>
    %56 = arith.truncf %55 : vector<64x32xf32> to vector<64x32xbf16>
    %c1_50 = arith.constant 1 : index
    %c0_51 = arith.constant 0 : index
    %c0_52 = arith.constant 0 : index
    %57 = vector.load %arg4[%c1_50, %c0_51, %c0_52] : memref<3x32x32xbf16, #tpu.memory_space<vmem>>, vector<1x32x32xbf16>
    %58 = vector.shape_cast %57 : vector<1x32x32xbf16> to vector<32x32xbf16>
    %cst_53 = arith.constant dense<0.000000e+00> : vector<64x32xf32>
    %59 = tpu.matmul %56, %58, %cst_53 {dimension_numbers = #tpu.dot_dimension_numbers<[1], [0], [0], [1], [0, 0, 1, 1], [], []>} : vector<64x32xbf16>, vector<32x32xbf16>, vector<64x32xf32> -> vector<64x32xf32>
    %60 = arith.addf %54, %59 : vector<64x32xf32>
    %c2_54 = arith.constant 2 : index
    %c0_55 = arith.constant 0 : index
    %61 = vector.load %arg9[%c2_54, %c0_55] : memref<256x32xf32, #tpu.memory_space<vmem>>, vector<64x32xf32>
    %62 = arith.truncf %61 : vector<64x32xf32> to vector<64x32xbf16>
    %c2_56 = arith.constant 2 : index
    %c0_57 = arith.constant 0 : index
    %c0_58 = arith.constant 0 : index
    %63 = vector.load %arg4[%c2_56, %c0_57, %c0_58] : memref<3x32x32xbf16, #tpu.memory_space<vmem>>, vector<1x32x32xbf16>
    %64 = vector.shape_cast %63 : vector<1x32x32xbf16> to vector<32x32xbf16>
    %cst_59 = arith.constant dense<0.000000e+00> : vector<64x32xf32>
    %65 = tpu.matmul %62, %64, %cst_59 {dimension_numbers = #tpu.dot_dimension_numbers<[1], [0], [0], [1], [0, 0, 1, 1], [], []>} : vector<64x32xbf16>, vector<32x32xbf16>, vector<64x32xf32> -> vector<64x32xf32>
    %66 = arith.addf %60, %65 : vector<64x32xf32>
    %c6 = arith.constant 6 : index
    %c0_60 = arith.constant 0 : index
    %67 = vector.load %arg6[%c6, %c0_60] : memref<9x32xf32, #tpu.memory_space<vmem>>, vector<1x32xf32>
    %68 = vector.broadcast %67 : vector<1x32xf32> to vector<64x32xf32>
    %69 = arith.addf %66, %68 : vector<64x32xf32>
    %cst_61 = arith.constant 0.000000e+00 : f32
    %70 = vector.broadcast %cst_61 : f32 to vector<64x32xf32>
    %71 = arith.maximumf %69, %70 : vector<64x32xf32>
    %c7 = arith.constant 7 : index
    %c0_62 = arith.constant 0 : index
    %72 = vector.load %arg6[%c7, %c0_62] : memref<9x32xf32, #tpu.memory_space<vmem>>, vector<1x32xf32>
    %73 = vector.broadcast %72 : vector<1x32xf32> to vector<64x32xf32>
    %74 = arith.mulf %71, %73 : vector<64x32xf32>
    %c8 = arith.constant 8 : index
    %c0_63 = arith.constant 0 : index
    %75 = vector.load %arg6[%c8, %c0_63] : memref<9x32xf32, #tpu.memory_space<vmem>>, vector<1x32xf32>
    %76 = vector.broadcast %75 : vector<1x32xf32> to vector<64x32xf32>
    %77 = arith.addf %74, %76 : vector<64x32xf32>
    %78 = arith.truncf %77 : vector<64x32xf32> to vector<64x32xbf16>
    %c0_64 = arith.constant 0 : index
    %c0_65 = arith.constant 0 : index
    %79 = vector.load %arg5[%c0_64, %c0_65] : memref<32x8xbf16, #tpu.memory_space<vmem>>, vector<32x8xbf16>
    %cst_66 = arith.constant dense<0.000000e+00> : vector<64x8xf32>
    %80 = tpu.matmul %78, %79, %cst_66 {dimension_numbers = #tpu.dot_dimension_numbers<[1], [0], [0], [1], [0, 0, 1, 1], [], []>} : vector<64x32xbf16>, vector<32x8xbf16>, vector<64x8xf32> -> vector<64x8xf32>
    %81 = tpu.iota {dimensions = array<i32: 0>} : vector<64x1xi32>
    %c8_i32 = arith.constant 8 : i32
    %c0_i32 = arith.constant 0 : i32
    %82 = arith.cmpi eq, %c8_i32, %c0_i32 : i32
    %c1_i32 = arith.constant 1 : i32
    %83 = arith.select %82, %c1_i32, %c8_i32 : i32
    %84 = vector.broadcast %83 : i32 to vector<64x1xi32>
    %85 = arith.remsi %81, %84 : vector<64x1xi32>
    %c0_i32_67 = arith.constant 0 : i32
    %86 = vector.broadcast %c0_i32_67 : i32 to vector<64x1xi32>
    %87 = arith.cmpi ne, %85, %86 : vector<64x1xi32>
    %c0_i32_68 = arith.constant 0 : i32
    %88 = vector.broadcast %c0_i32_68 : i32 to vector<64x1xi32>
    %89 = arith.cmpi slt, %85, %88 : vector<64x1xi32>
    %c0_i32_69 = arith.constant 0 : i32
    %90 = arith.cmpi slt, %83, %c0_i32_69 : i32
    %91 = vector.broadcast %90 : i1 to vector<64x1xi1>
    %92 = vector.broadcast %91 : vector<64x1xi1> to vector<64x1xi1>
    %93 = arith.xori %89, %92 : vector<64x1xi1>
    %94 = arith.andi %93, %87 : vector<64x1xi1>
    %95 = vector.broadcast %83 : i32 to vector<64x1xi32>
    %96 = arith.addi %85, %95 : vector<64x1xi32>
    %97 = arith.select %94, %96, %85 : vector<64x1xi1>, vector<64x1xi32>
    %c4_i32 = arith.constant 4 : i32
    %98 = vector.broadcast %c4_i32 : i32 to vector<64x1xi32>
    %99 = arith.cmpi slt, %97, %98 : vector<64x1xi32>
    %cst_70 = arith.constant 0xFF800000 : f32
    %100 = vector.shape_cast %99 : vector<64x1xi1> to vector<64x1xi1>
    %101 = vector.broadcast %100 : vector<64x1xi1> to vector<64x8xi1>
    %102 = vector.broadcast %cst_70 : f32 to vector<64x8xf32>
    %103 = arith.select %101, %80, %102 : vector<64x8xi1>, vector<64x8xf32>
    %c0_71 = arith.constant 0 : index
    %c0_72 = arith.constant 0 : index
    %104 = vector.load %arg10[%c0_71, %c0_72] : memref<64x8xf32, #tpu.memory_space<vmem>>, vector<64x8xf32>
    tpu.vector_store %arg10[%c0_71, %c0_72], %103 {strides = array<i32>} : memref<64x8xf32, #tpu.memory_space<vmem>>, vector<64x8xf32>,
    %c0_73 = arith.constant 0 : index
    %c0_74 = arith.constant 0 : index
    %105 = tpu.strided_load %arg10[%c0_73, %c0_74] {strides = array<i32: 2, 1>} : memref<64x8xf32, #tpu.memory_space<vmem>>, vector<32x8xf32>
    %c1_75 = arith.constant 1 : index
    %c0_76 = arith.constant 0 : index
    %106 = tpu.strided_load %arg10[%c1_75, %c0_76] {strides = array<i32: 2, 1>} : memref<64x8xf32, #tpu.memory_space<vmem>>, vector<32x8xf32>
    %107 = arith.maximumf %105, %106 : vector<32x8xf32>
    %c0_77 = arith.constant 0 : index
    %c0_78 = arith.constant 0 : index
    %108 = vector.load %arg10[%c0_77, %c0_78] : memref<64x8xf32, #tpu.memory_space<vmem>>, vector<32x8xf32>
    tpu.vector_store %arg10[%c0_77, %c0_78], %107 {strides = array<i32>} : memref<64x8xf32, #tpu.memory_space<vmem>>, vector<32x8xf32>,
    %c0_79 = arith.constant 0 : index
    %c0_80 = arith.constant 0 : index
    %109 = tpu.strided_load %arg10[%c0_79, %c0_80] {strides = array<i32: 2, 1>} : memref<64x8xf32, #tpu.memory_space<vmem>>, vector<16x8xf32>
    %c1_81 = arith.constant 1 : index
    %c0_82 = arith.constant 0 : index
    %110 = tpu.strided_load %arg10[%c1_81, %c0_82] {strides = array<i32: 2, 1>} : memref<64x8xf32, #tpu.memory_space<vmem>>, vector<16x8xf32>
    %111 = arith.maximumf %109, %110 : vector<16x8xf32>
    %c0_83 = arith.constant 0 : index
    %c0_84 = arith.constant 0 : index
    %112 = vector.load %arg10[%c0_83, %c0_84] : memref<64x8xf32, #tpu.memory_space<vmem>>, vector<16x8xf32>
    tpu.vector_store %arg10[%c0_83, %c0_84], %111 {strides = array<i32>} : memref<64x8xf32, #tpu.memory_space<vmem>>, vector<16x8xf32>,
    %c0_85 = arith.constant 0 : index
    %c0_86 = arith.constant 0 : index
    %113 = tpu.strided_load %arg10[%c0_85, %c0_86] {strides = array<i32: 2, 1>} : memref<64x8xf32, #tpu.memory_space<vmem>>, vector<8x8xf32>
    %c1_87 = arith.constant 1 : index
    %c0_88 = arith.constant 0 : index
    %114 = tpu.strided_load %arg10[%c1_87, %c0_88] {strides = array<i32: 2, 1>} : memref<64x8xf32, #tpu.memory_space<vmem>>, vector<8x8xf32>
    %115 = arith.maximumf %113, %114 : vector<8x8xf32>
    %c0_89 = arith.constant 0 : index
    %c0_90 = arith.constant 0 : index
    %116 = vector.load %arg7[%c0_89, %c0_90] : memref<1x8xf32, #tpu.memory_space<vmem>>, vector<1x8xf32>
    %117 = vector.broadcast %116 : vector<1x8xf32> to vector<8x8xf32>
    %118 = arith.addf %115, %117 : vector<8x8xf32>
    %c0_91 = arith.constant 0 : index
    %c0_92 = arith.constant 0 : index
    %119 = vector.load %arg8[%c0_91, %c0_92] : memref<8x8xf32, #tpu.memory_space<vmem>>, vector<8x8xf32>
    tpu.vector_store %arg8[%c0_91, %c0_92], %118 {strides = array<i32>} : memref<8x8xf32, #tpu.memory_space<vmem>>, vector<8x8xf32>,
    return
  }
  func.func @transform_0(%arg0: i32) -> (i32, i32) {
    %c0_i32 = arith.constant 0 : i32
    %c0_i32_0 = arith.constant 0 : i32
    return %arg0, %c0_i32 : i32, i32
  }
  func.func @transform_1(%arg0: i32) -> (i32, i32) {
    %c0_i32 = arith.constant 0 : i32
    %c0_i32_0 = arith.constant 0 : i32
    %c0_i32_1 = arith.constant 0 : i32
    return %c0_i32, %c0_i32_0 : i32, i32
  }
  func.func @transform_2(%arg0: i32) -> (i32, i32, i32) {
    %c0_i32 = arith.constant 0 : i32
    %c0_i32_0 = arith.constant 0 : i32
    %c0_i32_1 = arith.constant 0 : i32
    %c0_i32_2 = arith.constant 0 : i32
    return %c0_i32, %c0_i32_0, %c0_i32_1 : i32, i32, i32
  }
  func.func @transform_3(%arg0: i32) -> (i32, i32, i32) {
    %c0_i32 = arith.constant 0 : i32
    %c0_i32_0 = arith.constant 0 : i32
    %c0_i32_1 = arith.constant 0 : i32
    %c0_i32_2 = arith.constant 0 : i32
    return %c0_i32, %c0_i32_0, %c0_i32_1 : i32, i32, i32
  }
  func.func @transform_4(%arg0: i32) -> (i32, i32) {
    %c0_i32 = arith.constant 0 : i32
    %c0_i32_0 = arith.constant 0 : i32
    %c0_i32_1 = arith.constant 0 : i32
    return %c0_i32, %c0_i32_0 : i32, i32
  }
  func.func @transform_5(%arg0: i32) -> (i32, i32) {
    %c0_i32 = arith.constant 0 : i32
    %c0_i32_0 = arith.constant 0 : i32
    %c0_i32_1 = arith.constant 0 : i32
    return %c0_i32, %c0_i32_0 : i32, i32
  }
  func.func @transform_6(%arg0: i32) -> (i32, i32) {
    %c0_i32 = arith.constant 0 : i32
    %c0_i32_0 = arith.constant 0 : i32
    %c0_i32_1 = arith.constant 0 : i32
    return %c0_i32, %c0_i32_0 : i32, i32
  }
  func.func @transform_7(%arg0: i32) -> (i32, i32) {
    %c0_i32 = arith.constant 0 : i32
    %c0_i32_0 = arith.constant 0 : i32
    return %arg0, %c0_i32 : i32, i32
  }
}

</mosaic_0001>

<bundles_post_ra>
// kernel: tpu_custom_call.1
= control target key start
LH: loop header
LB: loop body
LE: loop exit
PB: predicated region body
PF: predicated region fallthrough
CT: control target
= control target key end

     0   :  { %s2591_s24 = smov 0   ;;  %s3107_s0 = inlined_call_operand.vmem [shape: bf16[512,12], index: 0, kind: input, shape index: {}]   ;;  %s3108_s1 = inlined_call_operand.vmem [shape: bf16[12,32], index: 1, kind: input, shape index: {}]   ;;  %s3109_s2 = inlined_call_operand.vmem [shape: bf16[3,32,32], index: 2, kind: input, shape index: {}]   ;;  %s3110_s3 = inlined_call_operand.vmem [shape: bf16[3,32,32], index: 3, kind: input, shape index: {}]   ;;  %s3111_s4 = inlined_call_operand.vmem [shape: bf16[32,8], index: 4, kind: input, shape index: {}]   ;;  %s3112_s5 = inlined_call_operand.vmem [shape: f32[9,32], index: 5, kind: input, shape index: {}]   ;;  %s3113_s6 = inlined_call_operand.vmem [shape: f32[1,8], index: 6, kind: input, shape index: {}]   ;;  %s3114_s7 = inlined_call_operand.vmem [shape: f32[16,8], index: 7, kind: output, shape index: {}]  }
   0x1 LB: > { %s2597_s25 = sadd.s32 4294967295, %s2549_s24   ;;  %p2171_p0 = scmp.ge.s32.totalorder %s2549_s24, 1  ;;  %s2549_s24 = sphi %s2591_s24, %s17_s24  }
   0x2   : > { %p238_p1 = scmp.lt.s32.totalorder %s2549_s24, 3 }
   0x4   : > { %p239_p2 = pnand %p2171_p0, %p238_p1 }
   0x5   : > { %s2172_s28 = sshll.u32 (!%p239_p2), %s2597_s25, 5  ;;  %p275_p4 = scmp.lt.s32.totalorder (!%p239_p2), %s2597_s25, 1 }
   0x6   : > { %242 = sbr.rel (%p239_p2) target bundleno = 1028 (0x404), region = 48  ;;  %p270_p3 = scmp.lt.s32.totalorder (!%p239_p2), %s2172_s28, 63 }
   0xb   : > { %v2512_v0 = vld [vmem:[%s3108_s1] sm:$0x3f]   ;;  %vm453_vm0 = vcmask 1045504   ;;  %s3116_s28 = smov (!%p270_p3, %s2172_s28), 63  ;;  %vm404_vm1 = vcmask 97280   ;;  %v2529_v18 = vld [vmem:[%s3109_s2 + $0x28] sm:$0xff]  }
   0xc   : > { %2503 = vmatprep.subr.msk.bf16.mxu0 %vm453_vm0, %v2512_v0  ;;  %v455_v1 = vsel %vm453_vm0, %v2512_v0, 0  ;;  %s2173_s29 = sshll.u32 %s3116_s28, 2  ;;  %v2530_v19 = vld [vmem:[%s3109_s2 + $0x18] sm:$0xff]   ;;  %v2531_v20 = vld [vmem:[%s3109_s2 + $0x10] sm:$0xff]   ;;  %v2532_v21 = vld [vmem:[%s3109_s2 + $0x20] sm:$0xff]   ;;  %vm724_vm2 = vcmask 261120  }
   0xd   : > { %2362 = vmatpush3.bf16.msra.mxu0 %v455_v1  ;;  %s2608_s9 = scalar_lea.vmem %s3107_s0, %s2173_s29  ;;  %2395 = vmatprep.subr.bf16.mxu1 %v2530_v19  ;;  %v2657_v22 = vld [vmem:[%s3109_s2 + $0x8] sm:$0xff]   ;;  %v2663_v23 = vld [vmem:[%s3112_s5] ss:$0 sm:$0xff]  ;;  %v2669_v26 = vld [vmem:[%s3112_s5 + $0x1] ss:$0 sm:$0xff]  ;;  %vm2062_vm4 = vcmask 64512  }
   0xe   : > { %v2513_v2 = vld [vmem:[%s2608_s9] sm:$0xff]   ;;  %v2514_v3 = vld [vmem:[%s2608_s9 + $0x8] sm:$0xff]   ;;  %v2515_v4 = vld [vmem:[%s2608_s9 + $0x10] sm:$0xff]   ;;  %2435 = vmatprep.subr.bf16.mxu0 %v2529_v18  ;;  %2396 = vmatpush3.bf16.msra.mxu1 %v2530_v19  ;;  %s3118_s25 = smov (!%p275_p4, %s2597_s25), 1 }
   0xf   : > { %2363 = vmatprep.mubr.msk.bf16.mxu0 %vm404_vm1, %v2513_v2  ;;  %v2516_v5 = vld [vmem:[%s2608_s9 + $0x18] sm:$0xff]   ;;  %v2517_v6 = vld [vmem:[%s2608_s9 + $0x20] sm:$0xff]   ;;  %v2518_v7 = vld [vmem:[%s2608_s9 + $0x28] sm:$0xff]   ;;  %2397 = vmatprep.subr.bf16.mxu1 %v2531_v20  ;;  %s2174_s14 = sshll.u32 %s3118_s25, 3 }
  0x10   : > { %2364 = vmatmul.mubr.msk.bf16.vlgmr.msra.gmra.mxu0 %vm404_vm1, %v2514_v3  ;;  %v2519_v8 = vld [vmem:[%s2608_s9 + $0x30] sm:$0xff]   ;;  %v2520_v9 = vld [vmem:[%s2608_s9 + $0x38] sm:$0xff]   ;;  %v2521_v10 = vld [vmem:[%s2608_s9 + $0x40] sm:$0xff]   ;;  %s278_s19 = scalar_lea.vmem %s3114_s7, %s2174_s14 }
  0x11   : > { %2367 = vmatprep.mubr.msk.bf16.mxu0 %vm404_vm1, %v2515_v4  ;;  %v2522_v11 = vld [vmem:[%s2608_s9 + $0x48] sm:$0xff]   ;;  %v2523_v12 = vld [vmem:[%s2608_s9 + $0x50] sm:$0xff]   ;;  %v2524_v13 = vld [vmem:[%s2608_s9 + $0x58] sm:$0xff]   ;;  %2436 = vmatpush3.bf16.msra.mxu0 %v2529_v18 }
  0x12   : > { %v2525_v14 = vld [vmem:[%s2608_s9 + $0x60] sm:$0xff]   ;;  %v2526_v15 = vld [vmem:[%s2608_s9 + $0x68] sm:$0xff]   ;;  %v2527_v16 = vld [vmem:[%s2608_s9 + $0x70] sm:$0xff]   ;;  %2437 = vmatprep.subr.bf16.mxu0 %v2532_v21  ;;  %2398 = vmatpush3.bf16.msra.mxu1 %v2531_v20 }
  0x13   : > { %v2528_v17 = vld [vmem:[%s2608_s9 + $0x78] sm:$0xff]   ;;  %2415 = vmatprep.subr.bf16.mxu1 %v2657_v22  ;;  %v2675_v30 = vld [vmem:[%s3112_s5 + $0x2] ss:$0 sm:$0xff] }
  0x15   : > { %2438 = vmatpush3.bf16.msra.mxu0 %v2532_v21 }
  0x18   : > { %2368 = vmatmul.mubr.msk.bf16.gmra.mxu0 %vm404_vm1, %v2516_v5 }
  0x19   : > { %2371 = vmatprep.mubr.msk.bf16.mxu0 %vm404_vm1, %v2517_v6 }
  0x20   : > { %2372 = vmatmul.mubr.msk.bf16.gmra.mxu0 %vm404_vm1, %v2518_v7 }
  0x21   : > { %2375 = vmatprep.mubr.msk.bf16.mxu0 %vm404_vm1, %v2519_v8 }
  0x28   : > { %2376 = vmatmul.mubr.msk.bf16.gmra.mxu0 %vm404_vm1, %v2520_v9 }
  0x29   : > { %2379 = vmatprep.mubr.msk.bf16.mxu0 %vm404_vm1, %v2521_v10 }
  0x30   : > { %2380 = vmatmul.mubr.msk.bf16.gmra.mxu0 %vm404_vm1, %v2522_v11 }
  0x31   : > { %2383 = vmatprep.mubr.msk.bf16.mxu0 %vm404_vm1, %v2523_v12 }
  0x38   : > { %2384 = vmatmul.mubr.msk.bf16.gmra.mxu0 %vm404_vm1, %v2524_v13 }
  0x39   : > { %2387 = vmatprep.mubr.msk.bf16.mxu0 %vm404_vm1, %v2525_v14 }
  0x40   : > { %2388 = vmatmul.mubr.msk.bf16.gmra.mxu0 %vm404_vm1, %v2526_v15 }
  0x41   : > { %2391 = vmatprep.mubr.msk.bf16.mxu0 %vm404_vm1, %v2527_v16 }
  0x48   : > { %2392 = vmatmul.mubr.msk.bf16.gmra.mxu0 %vm404_vm1, %v2528_v17 }
  0xd0   : > { %v2365_v24 = vpop.f32.mrf.mxu0 }
  0xd1   : > { %v500_v25 = vadd.f32 %v2365_v24, %v2663_v23 }
  0xd2   : > { %v491_v27 = vpop.f32.mrf.mxu0 }
  0xd3   : > { %v620_v28 = vmax.f32 %v500_v25, 0.0  ;;  %v492_v29 = vadd.f32 %v2663_v23, %v491_v27 }
  0xd4   : > { %v2366_v31 = vpop.f32.mrf.mxu0 }
  0xd5   : > { %v657_v32 = vmul.f32 %v2669_v26, %v620_v28  ;;  %v618_v33 = vmax.f32 %v492_v29, 0.0  ;;  %v503_v34 = vadd.f32 %v2366_v31, %v2663_v23 }
  0xd6   : > { %v494_v35 = vpop.f32.mrf.mxu0 }
  0xd7   : > { %v694_v36 = vadd.f32 %v2675_v30, %v657_v32  ;;  %v655_v37 = vmul.f32 %v2669_v26, %v618_v33  ;;  %v621_v38 = vmax.f32 %v503_v34, 0.0  ;;  %v495_v39 = vadd.f32 %v2663_v23, %v494_v35 }
  0xd8   : > { %v2369_v40 = vpop.f32.mrf.mxu0 }
  0xd9   : > { %727 = vst.msk [vmem:[#allocation2 + $0x10] sm:$0xff] %vm724_vm2, %v694_v36  ;;  %v692_v41 = vadd.f32 %v2675_v30, %v655_v37  ;;  %v658_v42 = vmul.f32 %v2669_v26, %v621_v38  ;;  %v619_v43 = vmax.f32 %v495_v39, 0.0  ;;  %v516_v44 = vadd.f32 %v2369_v40, %v2663_v23 }
  0xda   : > { %v507_v45 = vpop.f32.mrf.mxu0 }
  0xdb   : > { %725 = vst.msk [vmem:[#allocation2] sm:$0xff] %vm724_vm2, %v692_v41  ;;  %v695_v46 = vadd.f32 %v2675_v30, %v658_v42  ;;  %v656_v47 = vmul.f32 %v2669_v26, %v619_v43  ;;  %v624_v48 = vmax.f32 %v516_v44, 0.0  ;;  %v508_v49 = vadd.f32 %v2663_v23, %v507_v45 }
  0xdc   : > { %v2370_v50 = vpop.f32.mrf.mxu0 }
  0xdd   : > { %728 = vst.msk [vmem:[#allocation2 + $0x18] sm:$0xff] %vm724_vm2, %v695_v46  ;;  %v693_v51 = vadd.f32 %v2675_v30, %v656_v47  ;;  %v661_v52 = vmul.f32 %v2669_v26, %v624_v48  ;;  %v622_v53 = vmax.f32 %v508_v49, 0.0  ;;  %v519_v54 = vadd.f32 %v2370_v50, %v2663_v23 }
  0xde   : > { %v510_v55 = vpop.f32.mrf.mxu0 }
  0xdf   : > { %726 = vst.msk [vmem:[#allocation2 + $0x8] sm:$0xff] %vm724_vm2, %v693_v51  ;;  %v698_v56 = vadd.f32 %v2675_v30, %v661_v52  ;;  %v659_v57 = vmul.f32 %v2669_v26, %v622_v53  ;;  %v625_v58 = vmax.f32 %v519_v54, 0.0  ;;  %v511_v59 = vadd.f32 %v2663_v23, %v510_v55 }
  0xe0   : > { %v2373_v60 = vpop.f32.mrf.mxu0 }
  0xe1   : > { %731 = vst.msk [vmem:[#allocation2 + $0x30] sm:$0xff] %vm724_vm2, %v698_v56  ;;  %v696_v61 = vadd.f32 %v2675_v30, %v659_v57  ;;  %v662_v62 = vmul.f32 %v2669_v26, %v625_v58  ;;  %v623_v63 = vmax.f32 %v511_v59, 0.0  ;;  %v532_v0 = vadd.f32 %v2373_v60, %v2663_v23 }
  0xe2   : > { %v523_v1 = vpop.f32.mrf.mxu0 }
  0xe3   : > { %729 = vst.msk [vmem:[#allocation2 + $0x20] sm:$0xff] %vm724_vm2, %v696_v61  ;;  %v699_v2 = vadd.f32 %v2675_v30, %v662_v62  ;;  %v660_v3 = vmul.f32 %v2669_v26, %v623_v63  ;;  %v628_v4 = vmax.f32 %v532_v0, 0.0  ;;  %v524_v5 = vadd.f32 %v2663_v23, %v523_v1 }
  0xe4   : > { %v759_v6 = vld [vmem:[#allocation2 + $0x10] ss:$2 sm:$0xff]  ;;  %v791_v7 = vld [vmem:[#allocation2 + $0x11] ss:$2 sm:$0xff]  ;;  %v2374_v8 = vpop.f32.mrf.mxu0 }
  0xe5   : > { %v2706_v9 = vmax.f32 %v759_v6, %v791_v7  ;;  %732 = vst.msk [vmem:[#allocation2 + $0x38] sm:$0xff] %vm724_vm2, %v699_v2  ;;  %v697_v10 = vadd.f32 %v2675_v30, %v660_v3  ;;  %v665_v11 = vmul.f32 %v2669_v26, %v628_v4  ;;  %v626_v12 = vmax.f32 %v524_v5, 0.0 }
  0xe6   : > { %v757_v13 = vld [vmem:[#allocation2] ss:$2 sm:$0xff]  ;;  %v789_v14 = vld [vmem:[#allocation2 + $0x1] ss:$2 sm:$0xff]  ;;  %v535_v15 = vadd.f32 %v2374_v8, %v2663_v23  ;;  %v526_v16 = vpop.f32.mrf.mxu0 }
  0xe7   : > { %v2712_v17 = vmax.f32 %v757_v13, %v789_v14  ;;  %837 = vst.msk [vmem:[#allocation2 + $0x8] sm:$0xff] %vm724_vm2, %v2706_v9  ;;  %730 = vst.msk [vmem:[#allocation2 + $0x28] sm:$0xff] %vm724_vm2, %v697_v10  ;;  %v702_v18 = vadd.f32 %v2675_v30, %v665_v11  ;;  %v663_v19 = vmul.f32 %v2669_v26, %v626_v12 }
  0xe8   : > { %v527_v20 = vadd.f32 %v2663_v23, %v526_v16  ;;  %v629_v21 = vmax.f32 %v535_v15, 0.0  ;;  %v2377_v24 = vpop.f32.mrf.mxu0 }
  0xe9   : > { %836 = vst.msk [vmem:[#allocation2] sm:$0xff] %vm724_vm2, %v2712_v17  ;;  %735 = vst.msk [vmem:[#allocation2 + $0x50] sm:$0xff] %vm724_vm2, %v702_v18  ;;  %v700_v25 = vadd.f32 %v2675_v30, %v663_v19  ;;  %v548_v28 = vadd.f32 %v2377_v24, %v2663_v23  ;;  %v852_v29 = vpack.c.bf16 %v2706_v9, %v2712_v17 }
  0xea   : > { %v627_v27 = vmax.f32 %v527_v20, 0.0  ;;  %v666_v31 = vmul.f32 %v2669_v26, %v629_v21  ;;  %v539_v32 = vpop.f32.mrf.mxu0 }
  0xeb   : > { %733 = vst.msk [vmem:[#allocation2 + $0x40] sm:$0xff] %vm724_vm2, %v700_v25  ;;  %v632_v34 = vmax.f32 %v548_v28, 0.0  ;;  %v540_v35 = vadd.f32 %v2663_v23, %v539_v32 }
  0xec   : > { %v664_v33 = vmul.f32 %v2669_v26, %v627_v27  ;;  %v763_v36 = vld [vmem:[#allocation2 + $0x30] ss:$2 sm:$0xff]  ;;  %v795_v37 = vld [vmem:[#allocation2 + $0x31] ss:$2 sm:$0xff]  ;;  %v703_v38 = vadd.f32 %v2675_v30, %v666_v31  ;;  %v2378_v39 = vpop.f32.mrf.mxu0 }
  0xed   : > { %v2732_v40 = vmax.f32 %v763_v36, %v795_v37  ;;  %v669_v42 = vmul.f32 %v2669_v26, %v632_v34  ;;  %v630_v43 = vmax.f32 %v540_v35, 0.0  ;;  %v551_v46 = vadd.f32 %v2378_v39, %v2663_v23 }
  0xee   : > { %v701_v41 = vadd.f32 %v2675_v30, %v664_v33  ;;  %v761_v44 = vld [vmem:[#allocation2 + $0x20] ss:$2 sm:$0xff]  ;;  %v793_v45 = vld [vmem:[#allocation2 + $0x21] ss:$2 sm:$0xff]  ;;  %736 = vst.msk [vmem:[#allocation2 + $0x58] sm:$0xff] %vm724_vm2, %v703_v38  ;;  %v542_v47 = vpop.f32.mrf.mxu0 }
  0xef   : > { %839 = vst.msk [vmem:[#allocation2 + $0x18] sm:$0xff] %vm724_vm2, %v2732_v40  ;;  %v2740_v48 = vmax.f32 %v761_v44, %v793_v45  ;;  %v706_v49 = vadd.f32 %v2675_v30, %v669_v42  ;;  %v667_v50 = vmul.f32 %v2669_v26, %v630_v43  ;;  %v543_v51 = vadd.f32 %v2663_v23, %v542_v47 }
  0xf0   : > { %734 = vst.msk [vmem:[#allocation2 + $0x48] sm:$0xff] %vm724_vm2, %v701_v41  ;;  %v633_v52 = vmax.f32 %v551_v46, 0.0  ;;  %v2381_v53 = vpop.f32.mrf.mxu0  ;;  %v864_v19 = vld [vmem:[#allocation2 + $0x1] sm:$0xff] }
  0xf1   : > { %838 = vst.msk [vmem:[#allocation2 + $0x10] sm:$0xff] %vm724_vm2, %v2740_v48  ;;  %739 = vst.msk [vmem:[#allocation2 + $0x70] sm:$0xff] %vm724_vm2, %v706_v49  ;;  %v704_v54 = vadd.f32 %v2675_v30, %v667_v50  ;;  %v631_v55 = vmax.f32 %v543_v51, 0.0  ;;  %v564_v56 = vadd.f32 %v2381_v53, %v2663_v23  ;;  %v853_v57 = vpack.c.bf16 %v2732_v40, %v2740_v48  ;;  %v1159_v31 = vld [vmem:[#allocation2 + $0x2] sm:$0xff]  ;;  %v2535_v40 = vld [vmem:[%s3110_s3 + $0x18] sm:$0xff]  }
  0xf2   : > { %v670_v58 = vmul.f32 %v2669_v26, %v633_v52  ;;  %v555_v59 = vpop.f32.mrf.mxu0  ;;  %v2537_v48 = vld [vmem:[%s3110_s3 + $0x28] sm:$0xff]  }
  0xf3   : > { %737 = vst.msk [vmem:[#allocation2 + $0x60] sm:$0xff] %vm724_vm2, %v704_v54  ;;  %v668_v60 = vmul.f32 %v2669_v26, %v631_v55  ;;  %v636_v61 = vmax.f32 %v564_v56, 0.0  ;;  %v556_v62 = vadd.f32 %v2663_v23, %v555_v59  ;;  %2479 = vmatprep.subr.bf16.mxu0 %v2537_v48 }
  0xf4   : > { %v707_v63 = vadd.f32 %v2675_v30, %v670_v58  ;;  %v2382_v0 = vpop.f32.mrf.mxu0 }
  0xf5   : > { %v767_v1 = vld [vmem:[#allocation2 + $0x50] ss:$2 sm:$0xff]  ;;  %v799_v2 = vld [vmem:[#allocation2 + $0x51] ss:$2 sm:$0xff]  ;;  %v705_v3 = vadd.f32 %v2675_v30, %v668_v60  ;;  %v673_v4 = vmul.f32 %v2669_v26, %v636_v61  ;;  %v634_v5 = vmax.f32 %v556_v62, 0.0  ;;  %v567_v6 = vadd.f32 %v2382_v0, %v2663_v23 }
  0xf6   : > { %v2761_v7 = vmax.f32 %v767_v1, %v799_v2  ;;  %740 = vst.msk [vmem:[#allocation2 + $0x78] sm:$0xff] %vm724_vm2, %v707_v63  ;;  %v558_v11 = vpop.f32.mrf.mxu0 }
  0xf7   : > { %v765_v8 = vld [vmem:[#allocation2 + $0x40] ss:$2 sm:$0xff]  ;;  %v797_v10 = vld [vmem:[#allocation2 + $0x41] ss:$2 sm:$0xff]  ;;  %738 = vst.msk [vmem:[#allocation2 + $0x68] sm:$0xff] %vm724_vm2, %v705_v3  ;;  %v710_v13 = vadd.f32 %v2675_v30, %v673_v4  ;;  %v671_v14 = vmul.f32 %v2669_v26, %v634_v5  ;;  %v637_v15 = vmax.f32 %v567_v6, 0.0  ;;  %v559_v16 = vadd.f32 %v2663_v23, %v558_v11 }
  0xf8   : > { %v2764_v12 = vmax.f32 %v765_v8, %v797_v10  ;;  %841 = vst.msk [vmem:[#allocation2 + $0x28] sm:$0xff] %vm724_vm2, %v2761_v7  ;;  %v2385_v18 = vpop.f32.mrf.mxu0  ;;  %v865_v20 = vld [vmem:[#allocation2 + $0x9] sm:$0xff]  ;;  %v866_v59 = vld [vmem:[#allocation2 + $0x11] sm:$0xff]  ;;  %v2534_v3 = vld [vmem:[%s3109_s2] sm:$0xff]  }
  0xf9   : > { %v1160_v21 = vld [vmem:[#allocation2 + $0xa] sm:$0xff]  ;;  %743 = vst.msk [vmem:[#allocation2 + $0x90] sm:$0xff] %vm724_vm2, %v710_v13  ;;  %v708_v24 = vadd.f32 %v2675_v30, %v671_v14  ;;  %v674_v25 = vmul.f32 %v2669_v26, %v637_v15  ;;  %v580_v27 = vadd.f32 %v2385_v18, %v2663_v23  ;;  %v880_v28 = vpack.c.bf16 %v865_v20, %v864_v19  ;;  %v1161_v2 = vld [vmem:[#allocation2 + $0x12] sm:$0xff] }
  0xfa   : > { %840 = vst.msk [vmem:[#allocation2 + $0x20] sm:$0xff] %vm724_vm2, %v2764_v12  ;;  %v635_v32 = vmax.f32 %v559_v16, 0.0  ;;  %v571_v33 = vpop.f32.mrf.mxu0  ;;  %v1175_v34 = vpack.c.bf16 %v1160_v21, %v1159_v31 }
  0xfb   : > { %741 = vst.msk [vmem:[#allocation2 + $0x80] sm:$0xff] %vm724_vm2, %v708_v24  ;;  %v711_v35 = vadd.f32 %v2675_v30, %v674_v25  ;;  %v640_v36 = vmax.f32 %v580_v27, 0.0  ;;  %v572_v37 = vadd.f32 %v2663_v23, %v571_v33  ;;  %2399 = vmatprep.mubr.msk.bf16.mxu1 %vm724_vm2, %v880_v28 }
  0xfc   : > { %v672_v38 = vmul.f32 %v2669_v26, %v635_v32  ;;  %2439 = vmatprep.mubr.msk.bf16.mxu0 %vm724_vm2, %v1175_v34  ;;  %v2386_v39 = vpop.f32.mrf.mxu0 }
  0xfd   : > { %v771_v41 = vld [vmem:[#allocation2 + $0x70] ss:$2 sm:$0xff]  ;;  %v803_v42 = vld [vmem:[#allocation2 + $0x71] ss:$2 sm:$0xff]  ;;  %744 = vst.msk [vmem:[#allocation2 + $0x98] sm:$0xff] %vm724_vm2, %v711_v35  ;;  %v677_v43 = vmul.f32 %v2669_v26, %v640_v36  ;;  %v638_v44 = vmax.f32 %v572_v37, 0.0  ;;  %v583_v45 = vadd.f32 %v2386_v39, %v2663_v23 }
  0xfe   : > { %v2787_v46 = vmax.f32 %v771_v41, %v803_v42  ;;  %v769_v47 = vld [vmem:[#allocation2 + $0x60] ss:$2 sm:$0xff]  ;;  %v801_v49 = vld [vmem:[#allocation2 + $0x61] ss:$2 sm:$0xff]  ;;  %v709_v50 = vadd.f32 %v2675_v30, %v672_v38  ;;  %v574_v51 = vpop.f32.mrf.mxu0 }
  0xff   : > { %v2790_v52 = vmax.f32 %v769_v47, %v801_v49  ;;  %v714_v53 = vadd.f32 %v2675_v30, %v677_v43  ;;  %v675_v54 = vmul.f32 %v2669_v26, %v638_v44  ;;  %v641_v55 = vmax.f32 %v583_v45, 0.0 }
 0x100   : > { %843 = vst.msk [vmem:[#allocation2 + $0x38] sm:$0xff] %vm724_vm2, %v2787_v46  ;;  %742 = vst.msk [vmem:[#allocation2 + $0x88] sm:$0xff] %vm724_vm2, %v709_v50  ;;  %v575_v56 = vadd.f32 %v2663_v23, %v574_v51  ;;  %v2389_v58 = vpop.f32.mrf.mxu0 }
 0x101   : > { %v867_v60 = vld [vmem:[#allocation2 + $0x19] sm:$0xff]  ;;  %842 = vst.msk [vmem:[#allocation2 + $0x30] sm:$0xff] %vm724_vm2, %v2790_v52  ;;  %747 = vst.msk [vmem:[#allocation2 + $0xb0] sm:$0xff] %vm724_vm2, %v714_v53  ;;  %v712_v62 = vadd.f32 %v2675_v30, %v675_v54  ;;  %v678_v63 = vmul.f32 %v2669_v26, %v641_v55  ;;  %v596_v0 = vadd.f32 %v2389_v58, %v2663_v23  ;;  %v868_v43 = vld [vmem:[#allocation2 + $0x21] sm:$0xff] }
 0x102   : > { %v1162_v61 = vld [vmem:[#allocation2 + $0x1a] sm:$0xff]  ;;  %v881_v1 = vpack.c.bf16 %v867_v60, %v866_v59  ;;  %v639_v4 = vmax.f32 %v575_v56, 0.0  ;;  %v587_v5 = vpop.f32.mrf.mxu0  ;;  %v1163_v44 = vld [vmem:[#allocation2 + $0x22] sm:$0xff] }
 0x103   : > { %v1176_v6 = vpack.c.bf16 %v1162_v61, %v1161_v2  ;;  %745 = vst.msk [vmem:[#allocation2 + $0xa0] sm:$0xff] %vm724_vm2, %v712_v62  ;;  %v715_v8 = vadd.f32 %v2675_v30, %v678_v63  ;;  %v644_v10 = vmax.f32 %v596_v0, 0.0  ;;  %v588_v11 = vadd.f32 %v2663_v23, %v587_v5 }
 0x104   : > { %2400 = vmatmul.mubr.msk.bf16.vlgmr.msra.gmra.mxu1 %vm724_vm2, %v881_v1  ;;  %v775_v13 = vld [vmem:[#allocation2 + $0x90] ss:$2 sm:$0xff]  ;;  %v807_v14 = vld [vmem:[#allocation2 + $0x91] ss:$2 sm:$0xff]  ;;  %v676_v15 = vmul.f32 %v2669_v26, %v639_v4  ;;  %v2390_v16 = vpop.f32.mrf.mxu0 }
 0x105   : > { %2440 = vmatmul.mubr.msk.bf16.vlgmr.msra.gmra.mxu0 %vm724_vm2, %v1176_v6  ;;  %2416 = vmatpush3.bf16.msra.mxu1 %v2657_v22  ;;  %v2814_v18 = vmax.f32 %v775_v13, %v807_v14  ;;  %748 = vst.msk [vmem:[#allocation2 + $0xb8] sm:$0xff] %vm724_vm2, %v715_v8  ;;  %v681_v19 = vmul.f32 %v2669_v26, %v644_v10  ;;  %v642_v20 = vmax.f32 %v588_v11, 0.0 }
 0x106   : > { %v599_v21 = vadd.f32 %v2390_v16, %v2663_v23  ;;  %2417 = vmatprep.subr.bf16.mxu1 %v2534_v3  ;;  %v713_v24 = vadd.f32 %v2675_v30, %v676_v15  ;;  %v590_v25 = vpop.f32.mrf.mxu0  ;;  %2480 = vmatpush3.bf16.msra.mxu0 %v2537_v48 }
 0x107   : > { %845 = vst.msk [vmem:[#allocation2 + $0x48] sm:$0xff] %vm724_vm2, %v2814_v18  ;;  %v773_v27 = vld [vmem:[#allocation2 + $0x80] ss:$2 sm:$0xff]  ;;  %v805_v28 = vld [vmem:[#allocation2 + $0x81] ss:$2 sm:$0xff]  ;;  %v718_v22 = vadd.f32 %v2675_v30, %v681_v19  ;;  %v679_v31 = vmul.f32 %v2669_v26, %v642_v20  ;;  %v591_v33 = vadd.f32 %v2663_v23, %v590_v25 }
 0x108   : > { %v645_v32 = vmax.f32 %v599_v21, 0.0  ;;  %v2825_v34 = vmax.f32 %v773_v27, %v805_v28  ;;  %746 = vst.msk [vmem:[#allocation2 + $0xa8] sm:$0xff] %vm724_vm2, %v713_v24  ;;  %v2393_v35 = vpop.f32.mrf.mxu0  ;;  %v869_v36 = vld [vmem:[#allocation2 + $0x29] sm:$0xff]  ;;  %v870_v10 = vld [vmem:[#allocation2 + $0x31] sm:$0xff] }
 0x109   : > { %v1164_v37 = vld [vmem:[#allocation2 + $0x2a] sm:$0xff]  ;;  %2418 = vmatpush3.bf16.msra.mxu1 %v2534_v3  ;;  %751 = vst.msk [vmem:[#allocation2 + $0xd0] sm:$0xff] %vm724_vm2, %v718_v22  ;;  %v716_v38 = vadd.f32 %v2675_v30, %v679_v31  ;;  %v643_v41 = vmax.f32 %v591_v33, 0.0  ;;  %v612_v42 = vadd.f32 %v2393_v35, %v2663_v23  ;;  %v882_v47 = vpack.c.bf16 %v869_v36, %v868_v43  ;;  %v1165_v15 = vld [vmem:[#allocation2 + $0x32] sm:$0xff] }
 0x10a   : > { %v682_v39 = vmul.f32 %v2669_v26, %v645_v32  ;;  %844 = vst.msk [vmem:[#allocation2 + $0x40] sm:$0xff] %vm724_vm2, %v2825_v34  ;;  %v603_v45 = vpop.f32.mrf.mxu0  ;;  %v1177_v49 = vpack.c.bf16 %v1164_v37, %v1163_v44  ;;  %2455 = vmatprep.subr.bf16.mxu1 %v2535_v40 }
 0x10b   : > { %749 = vst.msk [vmem:[#allocation2 + $0xc0] sm:$0xff] %vm724_vm2, %v716_v38  ;;  %v680_v51 = vmul.f32 %v2669_v26, %v643_v41  ;;  %v648_v53 = vmax.f32 %v612_v42, 0.0  ;;  %v604_v54 = vadd.f32 %v2663_v23, %v603_v45  ;;  %2403 = vmatprep.mubr.msk.bf16.mxu1 %vm724_vm2, %v882_v47 }
 0x10c   : > { %v719_v50 = vadd.f32 %v2675_v30, %v682_v39  ;;  %v779_v55 = vld [vmem:[#allocation2 + $0xb0] ss:$2 sm:$0xff]  ;;  %v811_v56 = vld [vmem:[#allocation2 + $0xb1] ss:$2 sm:$0xff]  ;;  %2443 = vmatprep.mubr.msk.bf16.mxu0 %vm724_vm2, %v1177_v49  ;;  %v2394_v58 = vpop.f32.mrf.mxu0 }
 0x10d   : > { %v2840_v59 = vmax.f32 %v779_v55, %v811_v56  ;;  %v717_v60 = vadd.f32 %v2675_v30, %v680_v51  ;;  %v685_v61 = vmul.f32 %v2669_v26, %v648_v53  ;;  %v646_v62 = vmax.f32 %v604_v54, 0.0 }
 0x10e   : > { %752 = vst.msk [vmem:[#allocation2 + $0xd8] sm:$0xff] %vm724_vm2, %v719_v50  ;;  %v615_v63 = vadd.f32 %v2394_v58, %v2663_v23  ;;  %v606_v0 = vpop.f32.mrf.mxu0 }
 0x10f   : > { %847 = vst.msk [vmem:[#allocation2 + $0x58] sm:$0xff] %vm724_vm2, %v2840_v59  ;;  %v777_v1 = vld [vmem:[#allocation2 + $0xa0] ss:$2 sm:$0xff]  ;;  %v809_v2 = vld [vmem:[#allocation2 + $0xa1] ss:$2 sm:$0xff]  ;;  %750 = vst.msk [vmem:[#allocation2 + $0xc8] sm:$0xff] %vm724_vm2, %v717_v60  ;;  %v722_v3 = vadd.f32 %v2675_v30, %v685_v61  ;;  %v683_v4 = vmul.f32 %v2669_v26, %v646_v62  ;;  %v607_v5 = vadd.f32 %v2663_v23, %v606_v0 }
 0x110   : > { %v2852_v6 = vmax.f32 %v777_v1, %v809_v2  ;;  %v649_v8 = vmax.f32 %v615_v63, 0.0 }
 0x111   : > { %755 = vst.msk [vmem:[#allocation2 + $0xf0] sm:$0xff] %vm724_vm2, %v722_v3  ;;  %v720_v11 = vadd.f32 %v2675_v30, %v683_v4  ;;  %v647_v13 = vmax.f32 %v607_v5, 0.0  ;;  %v871_v14 = vld [vmem:[#allocation2 + $0x39] sm:$0xff]  ;;  %v1167_v36 = vld [vmem:[#allocation2 + $0x42] sm:$0xff]  ;;  %v854_v5 = vpack.c.bf16 %v2761_v7, %v2764_v12 }
 0x112   : > { %v1166_v16 = vld [vmem:[#allocation2 + $0x3a] sm:$0xff]  ;;  %846 = vst.msk [vmem:[#allocation2 + $0x50] sm:$0xff] %vm724_vm2, %v2852_v6  ;;  %v686_v19 = vmul.f32 %v2669_v26, %v649_v8  ;;  %v883_v20 = vpack.c.bf16 %v871_v14, %v870_v10  ;;  %v855_v8 = vpack.c.bf16 %v2787_v46, %v2790_v52  ;;  %v856_v10 = vpack.c.bf16 %v2814_v18, %v2825_v34  ;;  %v2916_v12 = vld [vmem:[%s3110_s3 + $0x8] sm:$0xff]  }
 0x113   : > { %v1178_v21 = vpack.c.bf16 %v1166_v16, %v1165_v15  ;;  %753 = vst.msk [vmem:[#allocation2 + $0xe0] sm:$0xff] %vm724_vm2, %v720_v11  ;;  %v684_v23 = vmul.f32 %v2669_v26, %v647_v13  ;;  %v872_v26 = vld [vmem:[#allocation2 + $0x41] sm:$0xff]  ;;  %v857_v9 = vpack.c.bf16 %v2840_v59, %v2852_v6 }
 0x114   : > { %v723_v27 = vadd.f32 %v2675_v30, %v686_v19  ;;  %2404 = vmatmul.mubr.msk.bf16.gmra.mxu1 %vm724_vm2, %v883_v20  ;;  %v2538_v7 = vld [vmem:[%s3110_s3 + $0x20] sm:$0xff]  }
 0x115   : > { %v783_v24 = vld [vmem:[#allocation2 + $0xd0] ss:$2 sm:$0xff]  ;;  %v815_v25 = vld [vmem:[#allocation2 + $0xd1] ss:$2 sm:$0xff]  ;;  %2444 = vmatmul.mubr.msk.bf16.gmra.mxu0 %vm724_vm2, %v1178_v21  ;;  %v721_v22 = vadd.f32 %v2675_v30, %v684_v23  ;;  %2481 = vmatprep.subr.bf16.mxu0 %v2538_v7 }
 0x116   : > { %v833_v28 = vmax.f32 %v783_v24, %v815_v25  ;;  %v781_v31 = vld [vmem:[#allocation2 + $0xc0] ss:$2 sm:$0xff]  ;;  %v813_v32 = vld [vmem:[#allocation2 + $0xc1] ss:$2 sm:$0xff]  ;;  %756 = vst.msk [vmem:[#allocation2 + $0xf8] sm:$0xff] %vm724_vm2, %v723_v27  ;;  %2482 = vmatpush3.bf16.msra.mxu0 %v2538_v7 }
 0x117   : > { %v832_v33 = vmax.f32 %v781_v31, %v813_v32  ;;  %754 = vst.msk [vmem:[#allocation2 + $0xe8] sm:$0xff] %vm724_vm2, %v721_v22 }
 0x118   : > { %849 = vst.msk [vmem:[#allocation2 + $0x68] sm:$0xff] %vm724_vm2, %v833_v28 }
 0x119   : > { %848 = vst.msk [vmem:[#allocation2 + $0x60] sm:$0xff] %vm724_vm2, %v832_v33  ;;  %v873_v35 = vld [vmem:[#allocation2 + $0x49] sm:$0xff]  ;;  %v874_v47 = vld [vmem:[#allocation2 + $0x51] sm:$0xff]  ;;  %v858_v17 = vpack.c.bf16 %v833_v28, %v832_v33 }
 0x11a   : > { %v1168_v37 = vld [vmem:[#allocation2 + $0x4a] sm:$0xff]  ;;  %v884_v38 = vpack.c.bf16 %v873_v35, %v872_v26  ;;  %v1169_v50 = vld [vmem:[#allocation2 + $0x52] sm:$0xff] }
 0x11b   : > { %v1179_v39 = vpack.c.bf16 %v1168_v37, %v1167_v36  ;;  %v2938_v36 = vld [vmem:[%s3112_s5 + $0x3] ss:$0 sm:$0xff] }
 0x11c   : > { %2407 = vmatprep.mubr.msk.bf16.mxu1 %vm724_vm2, %v884_v38 }
 0x11d   : > { %2447 = vmatprep.mubr.msk.bf16.mxu0 %vm724_vm2, %v1179_v39  ;;  %v787_v30 = vld [vmem:[#allocation2 + $0xf0] ss:$2 sm:$0xff]  ;;  %v819_v41 = vld [vmem:[#allocation2 + $0xf1] ss:$2 sm:$0xff] }
 0x11e   : > { %v835_v42 = vmax.f32 %v787_v30, %v819_v41  ;;  %v785_v43 = vld [vmem:[#allocation2 + $0xe0] ss:$2 sm:$0xff]  ;;  %v817_v44 = vld [vmem:[#allocation2 + $0xe1] ss:$2 sm:$0xff] }
 0x11f   : > { %v834_v45 = vmax.f32 %v785_v43, %v817_v44 }
 0x120   : > { %851 = vst.msk [vmem:[#allocation2 + $0x78] sm:$0xff] %vm724_vm2, %v835_v42  ;;  %v875_v49 = vld [vmem:[#allocation2 + $0x59] sm:$0xff]  ;;  %v876_v55 = vld [vmem:[#allocation2 + $0x61] sm:$0xff] }
 0x121   : > { %v1170_v51 = vld [vmem:[#allocation2 + $0x5a] sm:$0xff]  ;;  %850 = vst.msk [vmem:[#allocation2 + $0x70] sm:$0xff] %vm724_vm2, %v834_v45  ;;  %v885_v53 = vpack.c.bf16 %v875_v49, %v874_v47  ;;  %v1171_v56 = vld [vmem:[#allocation2 + $0x62] sm:$0xff] }
 0x122   : > { %v1180_v54 = vpack.c.bf16 %v1170_v51, %v1169_v50  ;;  %v2944_v47 = vld [vmem:[%s3112_s5 + $0x4] ss:$0 sm:$0xff] }
 0x123   : > { %2408 = vmatmul.mubr.msk.bf16.gmra.mxu1 %vm724_vm2, %v885_v53 }
 0x124   : > { %2448 = vmatmul.mubr.msk.bf16.gmra.mxu0 %vm724_vm2, %v1180_v54 }
 0x127   : > { %v879_v58 = vld [vmem:[#allocation2 + $0x79] sm:$0xff] }
 0x128   : > { %v877_v60 = vld [vmem:[#allocation2 + $0x69] sm:$0xff]  ;;  %v878_v62 = vld [vmem:[#allocation2 + $0x71] sm:$0xff]  ;;  %v1174_v3 = vld [vmem:[#allocation2 + $0x7a] sm:$0xff] }
 0x129   : > { %v1172_v61 = vld [vmem:[#allocation2 + $0x6a] sm:$0xff]  ;;  %v886_v63 = vpack.c.bf16 %v877_v60, %v876_v55  ;;  %v887_v1 = vpack.c.bf16 %v879_v58, %v878_v62  ;;  %v1173_v2 = vld [vmem:[#allocation2 + $0x72] sm:$0xff]  ;;  %v2950_v55 = vld [vmem:[%s3112_s5 + $0x5] ss:$0 sm:$0xff] }
 0x12a   : > { %v1181_v0 = vpack.c.bf16 %v1172_v61, %v1171_v56  ;;  %v1182_v4 = vpack.c.bf16 %v1174_v3, %v1173_v2 }
 0x12b   : > { %2411 = vmatprep.mubr.msk.bf16.mxu1 %vm724_vm2, %v886_v63 }
 0x12c   : > { %2451 = vmatprep.mubr.msk.bf16.mxu0 %vm724_vm2, %v1181_v0  ;;  %2412 = vmatmul.mubr.msk.bf16.gmra.mxu1 %vm724_vm2, %v887_v1 }
 0x12d   : > { %2452 = vmatmul.mubr.msk.bf16.gmra.mxu0 %vm724_vm2, %v1182_v4  ;;  %2419 = vmatprep.mubr.msk.bf16.mxu1 %vm724_vm2, %v852_v29  ;;  %v859_v29 = vpack.c.bf16 %v835_v42, %v834_v45 }
 0x134   : > { %2420 = vmatmul.mubr.msk.bf16.vlgmr.msra.gmra.mxu1 %vm724_vm2, %v853_v57  ;;  %v2536_v57 = vld [vmem:[%s3110_s3 + $0x10] sm:$0xff]  }
 0x135   : > { %2423 = vmatprep.mubr.msk.bf16.mxu1 %vm724_vm2, %v854_v5  ;;  %2456 = vmatpush3.bf16.msra.mxu1 %v2535_v40 }
 0x136   : > { %2457 = vmatprep.subr.bf16.mxu1 %v2536_v57 }
 0x139   : > { %2458 = vmatpush3.bf16.msra.mxu1 %v2536_v57 }
 0x13a   : > { %2467 = vmatprep.subr.bf16.mxu1 %v2916_v12 }
 0x13c   : > { %2424 = vmatmul.mubr.msk.bf16.gmra.mxu1 %vm724_vm2, %v855_v8 }
 0x13d   : > { %2427 = vmatprep.mubr.msk.bf16.mxu1 %vm724_vm2, %v856_v10 }
 0x144   : > { %2428 = vmatmul.mubr.msk.bf16.gmra.mxu1 %vm724_vm2, %v857_v9 }
 0x145   : > { %2431 = vmatprep.mubr.msk.bf16.mxu1 %vm724_vm2, %v858_v17 }
 0x14c   : > { %2432 = vmatmul.mubr.msk.bf16.gmra.mxu1 %vm724_vm2, %v859_v29 }
 0x1c4   : > { %v2401_v46 = vpop.f32.mrf.mxu1 }
 0x1c5   : > { %v2441_v11 = vpop.f32.mrf.mxu0 }
 0x1c6   : > { %v963_v52 = vpop.f32.mrf.mxu1 }
 0x1c7   : > { %v1258_v14 = vpop.f32.mrf.mxu0 }
 0x1c8   : > { %v2402_v18 = vpop.f32.mrf.mxu1 }
 0x1c9   : > { %v2442_v19 = vpop.f32.mrf.mxu0 }
 0x1ca   : > { %v966_v34 = vpop.f32.mrf.mxu1 }
 0x1cb   : > { %v1261_v23 = vpop.f32.mrf.mxu0 }
 0x1d4   : > { %v2405_v59 = vpop.f32.mrf.mxu1 }
 0x1d5   : > { %v2445_v25 = vpop.f32.mrf.mxu0 }
 0x1d6   : > { %v979_v6 = vpop.f32.mrf.mxu1 }
 0x1d7   : > { %v1274_v22 = vpop.f32.mrf.mxu0 }
 0x1d8   : > { %v2406_v13 = vpop.f32.mrf.mxu1 }
 0x1d9   : > { %v2446_v33 = vpop.f32.mrf.mxu0 }
 0x1da   : > { %v982_v15 = vpop.f32.mrf.mxu1 }
 0x1db   : > { %v1277_v38 = vpop.f32.mrf.mxu0 }
 0x1e3   : > { %v2919_v16 = vpop.f32.mrf.mxu1 }
 0x1e4   : > { %v2449_v42 = vpop.f32.mrf.mxu0 }
 0x1e5   : > { %v2921_v20 = vpop.f32.mrf.mxu1 }
 0x1e6   : > { %v1290_v58 = vpop.f32.mrf.mxu0 }
 0x1e7   : > { %v2923_v21 = vpop.f32.mrf.mxu1 }
 0x1e8   : > { %v2450_v17 = vpop.f32.mrf.mxu0 }
 0x1e9   : > { %v2925_v24 = vpop.f32.mrf.mxu1 }
 0x1ec   : > { %v2927_v27 = vpop.f32.mrf.mxu1 }
 0x1ee   : > { %v2929_v28 = vpop.f32.mrf.mxu1 }
 0x1f0   : > { %v2931_v31 = vpop.f32.mrf.mxu1 }
 0x1f2   : > { %v2933_v32 = vpop.f32.mrf.mxu1 }
 0x1f4   : > { %v2421_v26 = vpop.f32.mrf.mxu1 }
 0x1f5   : > { %v1105_v35 = vadd.f32 %v2421_v26, %v2401_v46 }
 0x1f6   : > { %v1096_v37 = vpop.f32.mrf.mxu1 }
 0x1f7   : > { %v1323_v39 = vadd.f32 %v2441_v11, %v1105_v35  ;;  %v1097_v30 = vadd.f32 %v1096_v37, %v963_v52 }
 0x1f8   : > { %v2422_v41 = vpop.f32.mrf.mxu1 }
 0x1f9   : > { %v1344_v43 = vadd.f32 %v2938_v36, %v1323_v39  ;;  %v1321_v44 = vadd.f32 %v1258_v14, %v1097_v30  ;;  %v1108_v45 = vadd.f32 %v2422_v41, %v2402_v18 }
 0x1fa   : > { %v1099_v49 = vpop.f32.mrf.mxu1 }
 0x1fb   : > { %v1360_v50 = vmax.f32 %v1344_v43, 0.0  ;;  %v1342_v51 = vadd.f32 %v2938_v36, %v1321_v44  ;;  %v1324_v53 = vadd.f32 %v2442_v19, %v1108_v45  ;;  %v1100_v54 = vadd.f32 %v1099_v49, %v966_v34 }
 0x1fc   : > { %v2425_v56 = vpop.f32.mrf.mxu1 }
 0x1fd   : > { %v1381_v60 = vmul.f32 %v2944_v47, %v1360_v50  ;;  %v1358_v61 = vmax.f32 %v1342_v51, 0.0  ;;  %v1345_v62 = vadd.f32 %v2938_v36, %v1324_v53  ;;  %v1322_v63 = vadd.f32 %v1261_v23, %v1100_v54  ;;  %v1293_v23 = vpop.f32.mrf.mxu0 }
 0x1fe   : > { %v1121_v0 = vadd.f32 %v2425_v56, %v2405_v59  ;;  %v1112_v1 = vpop.f32.mrf.mxu1 }
 0x1ff   : > { %v1402_v2 = vadd.f32 %v2950_v55, %v1381_v60  ;;  %v1379_v3 = vmul.f32 %v2944_v47, %v1358_v61  ;;  %v1361_v4 = vmax.f32 %v1345_v62, 0.0  ;;  %v1343_v5 = vadd.f32 %v2938_v36, %v1322_v63 }
 0x200   : > { %v1327_v8 = vadd.f32 %v2445_v25, %v1121_v0  ;;  %v1113_v10 = vadd.f32 %v1112_v1, %v979_v6  ;;  %v2426_v9 = vpop.f32.mrf.mxu1 }
 0x201   : > { %1418 = vst.msk [vmem:[#allocation2 + $0x10] sm:$0xff] %vm724_vm2, %v1402_v2  ;;  %v1400_v29 = vadd.f32 %v2950_v55, %v1379_v3  ;;  %v1382_v40 = vmul.f32 %v2944_v47, %v1361_v4  ;;  %v1359_v48 = vmax.f32 %v1343_v5, 0.0  ;;  %v1124_v57 = vadd.f32 %v2426_v9, %v2406_v13 }
 0x202   : > { %v1348_v7 = vadd.f32 %v2938_v36, %v1327_v8  ;;  %v1325_v46 = vadd.f32 %v1274_v22, %v1113_v10  ;;  %v1115_v52 = vpop.f32.mrf.mxu1 }
 0x203   : > { %1416 = vst.msk [vmem:[#allocation2] sm:$0xff] %vm724_vm2, %v1400_v29  ;;  %v1403_v18 = vadd.f32 %v2950_v55, %v1382_v40  ;;  %v1380_v34 = vmul.f32 %v2944_v47, %v1359_v48  ;;  %v1328_v59 = vadd.f32 %v2446_v33, %v1124_v57  ;;  %v1116_v6 = vadd.f32 %v1115_v52, %v982_v15 }
 0x204   : > { %v1364_v11 = vmax.f32 %v1348_v7, 0.0  ;;  %v1346_v14 = vadd.f32 %v2938_v36, %v1325_v46  ;;  %v2429_v19 = vpop.f32.mrf.mxu1 }
 0x205   : > { %1419 = vst.msk [vmem:[#allocation2 + $0x18] sm:$0xff] %vm724_vm2, %v1403_v18  ;;  %v1401_v13 = vadd.f32 %v2950_v55, %v1380_v34  ;;  %v1349_v25 = vadd.f32 %v2938_v36, %v1328_v59  ;;  %v1326_v22 = vadd.f32 %v1277_v38, %v1116_v6  ;;  %v1137_v26 = vadd.f32 %v2429_v19, %v2919_v16  ;;  %v2453_v38 = vpop.f32.mrf.mxu0 }
 0x206   : > { %v1385_v35 = vmul.f32 %v2944_v47, %v1364_v11  ;;  %v1362_v37 = vmax.f32 %v1346_v14, 0.0  ;;  %v1128_v39 = vpop.f32.mrf.mxu1 }
 0x207   : > { %1417 = vst.msk [vmem:[#allocation2 + $0x8] sm:$0xff] %vm724_vm2, %v1401_v13  ;;  %v1365_v15 = vmax.f32 %v1349_v25, 0.0  ;;  %v1347_v33 = vadd.f32 %v2938_v36, %v1326_v22  ;;  %v1331_v30 = vadd.f32 %v2449_v42, %v1137_v26  ;;  %v1129_v41 = vadd.f32 %v1128_v39, %v2921_v20  ;;  %v1306_v2 = vpop.f32.mrf.mxu0 }
 0x208   : > { %v1406_v43 = vadd.f32 %v2950_v55, %v1385_v35  ;;  %v1383_v44 = vmul.f32 %v2944_v47, %v1362_v37  ;;  %v2430_v45 = vpop.f32.mrf.mxu1 }
 0x209   : > { %v1386_v16 = vmul.f32 %v2944_v47, %v1365_v15  ;;  %v1363_v49 = vmax.f32 %v1347_v33, 0.0  ;;  %v1352_v50 = vadd.f32 %v2938_v36, %v1331_v30  ;;  %v1329_v51 = vadd.f32 %v1290_v58, %v1129_v41  ;;  %v2454_v34 = vpop.f32.mrf.mxu0 }
 0x20a   : > { %1422 = vst.msk [vmem:[#allocation2 + $0x30] sm:$0xff] %vm724_vm2, %v1406_v43  ;;  %v1404_v53 = vadd.f32 %v2950_v55, %v1383_v44  ;;  %v1140_v42 = vadd.f32 %v2430_v45, %v2923_v21  ;;  %v1131_v54 = vpop.f32.mrf.mxu1 }
 0x20b   : > { %v1407_v20 = vadd.f32 %v2950_v55, %v1386_v16  ;;  %v1384_v56 = vmul.f32 %v2944_v47, %v1363_v49  ;;  %v1368_v60 = vmax.f32 %v1352_v50, 0.0  ;;  %v1350_v61 = vadd.f32 %v2938_v36, %v1329_v51  ;;  %v1309_v15 = vpop.f32.mrf.mxu0 }
 0x20c   : > { %1420 = vst.msk [vmem:[#allocation2 + $0x20] sm:$0xff] %vm724_vm2, %v1404_v53  ;;  %v1332_v62 = vadd.f32 %v2450_v17, %v1140_v42  ;;  %v1132_v63 = vadd.f32 %v1131_v54, %v2925_v24  ;;  %v2433_v58 = vpop.f32.mrf.mxu1  ;;  %v1433_v0 = vld [vmem:[#allocation2 + $0x10] ss:$2 sm:$0xff]  ;;  %v1441_v1 = vld [vmem:[#allocation2 + $0x11] ss:$2 sm:$0xff] }
 0x20d   : > { %1423 = vst.msk [vmem:[#allocation2 + $0x38] sm:$0xff] %vm724_vm2, %v1407_v20  ;;  %v1405_v21 = vadd.f32 %v2950_v55, %v1384_v56  ;;  %v1389_v3 = vmul.f32 %v2944_v47, %v1368_v60  ;;  %v1366_v4 = vmax.f32 %v1350_v61, 0.0  ;;  %v1153_v5 = vadd.f32 %v2433_v58, %v2927_v27 }
 0x20e   : > { %v1353_v8 = vadd.f32 %v2938_v36, %v1332_v62  ;;  %v1330_v10 = vadd.f32 %v1293_v23, %v1132_v63  ;;  %v1144_v9 = vpop.f32.mrf.mxu1  ;;  %v1432_v17 = vld [vmem:[#allocation2] ss:$2 sm:$0xff]  ;;  %v1440_v29 = vld [vmem:[#allocation2 + $0x1] ss:$2 sm:$0xff]  ;;  %v2990_v24 = vmax.f32 %v1433_v0, %v1441_v1 }
 0x20f   : > { %1421 = vst.msk [vmem:[#allocation2 + $0x28] sm:$0xff] %vm724_vm2, %v1405_v21  ;;  %v1410_v40 = vadd.f32 %v2950_v55, %v1389_v3  ;;  %v1387_v48 = vmul.f32 %v2944_v47, %v1366_v4  ;;  %v1335_v57 = vadd.f32 %v2453_v38, %v1153_v5  ;;  %v1145_v7 = vadd.f32 %v1144_v9, %v2929_v28 }
 0x210   : > { %v1369_v46 = vmax.f32 %v1353_v8, 0.0  ;;  %v1351_v27 = vadd.f32 %v2938_v36, %v1330_v10  ;;  %v2434_v52 = vpop.f32.mrf.mxu1  ;;  %v2997_v18 = vmax.f32 %v1432_v17, %v1440_v29  ;;  %1457 = vst.msk [vmem:[#allocation2 + $0x8] sm:$0xff] %vm724_vm2, %v2990_v24 }
 0x211   : > { %1426 = vst.msk [vmem:[#allocation2 + $0x50] sm:$0xff] %vm724_vm2, %v1410_v40  ;;  %v1408_v59 = vadd.f32 %v2950_v55, %v1387_v48  ;;  %v1356_v6 = vadd.f32 %v2938_v36, %v1335_v57  ;;  %v1333_v11 = vadd.f32 %v1306_v2, %v1145_v7  ;;  %v1156_v14 = vadd.f32 %v2434_v52, %v2931_v31  ;;  %v2540_v52 = vld [vmem:[%s3110_s3] sm:$0xff]  }
 0x212   : > { %v1390_v28 = vmul.f32 %v2944_v47, %v1369_v46  ;;  %v1367_v19 = vmax.f32 %v1351_v27, 0.0  ;;  %v1147_v23 = vpop.f32.mrf.mxu1  ;;  %1456 = vst.msk [vmem:[#allocation2] sm:$0xff] %vm724_vm2, %v2997_v18 }
 0x213   : > { %1424 = vst.msk [vmem:[#allocation2 + $0x40] sm:$0xff] %vm724_vm2, %v1408_v59  ;;  %v1372_v13 = vmax.f32 %v1356_v6, 0.0  ;;  %v1354_v25 = vadd.f32 %v2938_v36, %v1333_v11  ;;  %v1336_v22 = vadd.f32 %v2454_v34, %v1156_v14  ;;  %v1148_v26 = vadd.f32 %v1147_v23, %v2933_v32 }
 0x214   : > { %v1435_v35 = vld [vmem:[#allocation2 + $0x30] ss:$2 sm:$0xff]  ;;  %v1443_v37 = vld [vmem:[#allocation2 + $0x31] ss:$2 sm:$0xff]  ;;  %v1411_v39 = vadd.f32 %v2950_v55, %v1390_v28  ;;  %v1388_v31 = vmul.f32 %v2944_v47, %v1367_v19 }
 0x215   : > { %v3013_v33 = vmax.f32 %v1435_v35, %v1443_v37  ;;  %v1393_v30 = vmul.f32 %v2944_v47, %v1372_v13  ;;  %v1370_v41 = vmax.f32 %v1354_v25, 0.0  ;;  %v1357_v43 = vadd.f32 %v2938_v36, %v1336_v22 }
 0x216   : > { %v1434_v44 = vld [vmem:[#allocation2 + $0x20] ss:$2 sm:$0xff]  ;;  %v1442_v45 = vld [vmem:[#allocation2 + $0x21] ss:$2 sm:$0xff]  ;;  %1427 = vst.msk [vmem:[#allocation2 + $0x58] sm:$0xff] %vm724_vm2, %v1411_v39  ;;  %v1409_v32 = vadd.f32 %v2950_v55, %v1388_v31  ;;  %v1334_v38 = vadd.f32 %v1309_v15, %v1148_v26 }
 0x217   : > { %v3019_v16 = vmax.f32 %v1434_v44, %v1442_v45  ;;  %v1414_v49 = vadd.f32 %v2950_v55, %v1393_v30  ;;  %v1391_v50 = vmul.f32 %v2944_v47, %v1370_v41  ;;  %v1373_v51 = vmax.f32 %v1357_v43, 0.0  ;;  %1459 = vst.msk [vmem:[#allocation2 + $0x18] sm:$0xff] %vm724_vm2, %v3013_v33 }
 0x218   : > { %1425 = vst.msk [vmem:[#allocation2 + $0x48] sm:$0xff] %vm724_vm2, %v1409_v32  ;;  %v1355_v53 = vadd.f32 %v2938_v36, %v1334_v38 }
 0x219   : > { %1430 = vst.msk [vmem:[#allocation2 + $0x70] sm:$0xff] %vm724_vm2, %v1414_v49  ;;  %v1412_v42 = vadd.f32 %v2950_v55, %v1391_v50  ;;  %v1394_v54 = vmul.f32 %v2944_v47, %v1373_v51  ;;  %1458 = vst.msk [vmem:[#allocation2 + $0x10] sm:$0xff] %vm724_vm2, %v3019_v16  ;;  %v1472_v1 = vld [vmem:[#allocation2 + $0x1] sm:$0xff]  ;;  %v1465_v35 = vpack.c.bf16 %v3013_v33, %v3019_v16 }
 0x21a   : > { %v1371_v20 = vmax.f32 %v1355_v53, 0.0  ;;  %v1667_v3 = vld [vmem:[#allocation2 + $0x2] sm:$0xff] }
 0x21b   : > { %1428 = vst.msk [vmem:[#allocation2 + $0x60] sm:$0xff] %vm724_vm2, %v1412_v42  ;;  %v1415_v56 = vadd.f32 %v2950_v55, %v1394_v54  ;;  %v2278_v54 = vld [vmem:[%s3112_s5 + $0x6] ss:$0 sm:$0xff] }
 0x21c   : > { %v1392_v60 = vmul.f32 %v2944_v47, %v1371_v20 }
 0x21d   : > { %v1437_v61 = vld [vmem:[#allocation2 + $0x50] ss:$2 sm:$0xff]  ;;  %v1445_v62 = vld [vmem:[#allocation2 + $0x51] ss:$2 sm:$0xff]  ;;  %1431 = vst.msk [vmem:[#allocation2 + $0x78] sm:$0xff] %vm724_vm2, %v1415_v56 }
 0x21e   : > { %v1453_v36 = vmax.f32 %v1437_v61, %v1445_v62  ;;  %v1413_v63 = vadd.f32 %v2950_v55, %v1392_v60 }
 0x21f   : > { %v1436_v58 = vld [vmem:[#allocation2 + $0x40] ss:$2 sm:$0xff]  ;;  %v1444_v0 = vld [vmem:[#allocation2 + $0x41] ss:$2 sm:$0xff] }
 0x220   : > { %1461 = vst.msk [vmem:[#allocation2 + $0x28] sm:$0xff] %vm724_vm2, %v1453_v36  ;;  %v1452_v2 = vmax.f32 %v1436_v58, %v1444_v0  ;;  %1429 = vst.msk [vmem:[#allocation2 + $0x68] sm:$0xff] %vm724_vm2, %v1413_v63  ;;  %v1473_v21 = vld [vmem:[#allocation2 + $0x9] sm:$0xff]  ;;  %v1474_v40 = vld [vmem:[#allocation2 + $0x11] sm:$0xff] }
 0x221   : > { %v1668_v4 = vld [vmem:[#allocation2 + $0xa] sm:$0xff]  ;;  %v1480_v5 = vpack.c.bf16 %v1473_v21, %v1472_v1  ;;  %v1669_v57 = vld [vmem:[#allocation2 + $0x12] sm:$0xff] }
 0x222   : > { %v1675_v47 = vpack.c.bf16 %v1668_v4, %v1667_v3  ;;  %1460 = vst.msk [vmem:[#allocation2 + $0x20] sm:$0xff] %vm724_vm2, %v1452_v2  ;;  %v1466_v37 = vpack.c.bf16 %v1453_v36, %v1452_v2 }
 0x223   : > { %2459 = vmatprep.mubr.msk.bf16.mxu1 %vm724_vm2, %v1480_v5 }
 0x224   : > { %2483 = vmatprep.mubr.msk.bf16.mxu0 %vm724_vm2, %v1675_v47  ;;  %v1439_v55 = vld [vmem:[#allocation2 + $0x70] ss:$2 sm:$0xff]  ;;  %v1447_v8 = vld [vmem:[#allocation2 + $0x71] ss:$2 sm:$0xff] }
 0x225   : > { %v1455_v10 = vmax.f32 %v1439_v55, %v1447_v8 }
 0x227   : > { %1463 = vst.msk [vmem:[#allocation2 + $0x38] sm:$0xff] %vm724_vm2, %v1455_v10  ;;  %v1438_v9 = vld [vmem:[#allocation2 + $0x60] ss:$2 sm:$0xff]  ;;  %v1446_v17 = vld [vmem:[#allocation2 + $0x61] ss:$2 sm:$0xff] }
 0x228   : > { %v1454_v29 = vmax.f32 %v1438_v9, %v1446_v17 }
 0x229   : > { %v1475_v48 = vld [vmem:[#allocation2 + $0x19] sm:$0xff]  ;;  %v1476_v34 = vld [vmem:[#allocation2 + $0x21] sm:$0xff] }
 0x22a   : > { %v1670_v7 = vld [vmem:[#allocation2 + $0x1a] sm:$0xff]  ;;  %1462 = vst.msk [vmem:[#allocation2 + $0x30] sm:$0xff] %vm724_vm2, %v1454_v29  ;;  %v1481_v46 = vpack.c.bf16 %v1475_v48, %v1474_v40  ;;  %v1671_v59 = vld [vmem:[#allocation2 + $0x22] sm:$0xff]  ;;  %v1467_v39 = vpack.c.bf16 %v1455_v10, %v1454_v29 }
 0x22b   : > { %v1676_v27 = vpack.c.bf16 %v1670_v7, %v1669_v57  ;;  %v2279_v10 = vld [vmem:[%s3112_s5 + $0x7] ss:$0 sm:$0xff] }
 0x22c   : > { %2460 = vmatmul.mubr.msk.bf16.vlgmr.msra.gmra.mxu1 %vm724_vm2, %v1481_v46 }
 0x22d   : > { %2484 = vmatmul.mubr.msk.bf16.vlgmr.msra.gmra.mxu0 %vm724_vm2, %v1676_v27  ;;  %2468 = vmatpush3.bf16.msra.mxu1 %v2916_v12  ;;  %v1464_v12 = vpack.c.bf16 %v2990_v24, %v2997_v18  ;;  %v2541_v24 = vld [vmem:[%s3111_s4 + $0x8] sm:$0xff]   ;;  %v2542_v18 = vld [vmem:[%s3111_s4] sm:$0xff]  }
 0x22e   : > { %2469 = vmatprep.subr.bf16.mxu1 %v2540_v52  ;;  %v1479_v6 = vld [vmem:[#allocation2 + $0x39] sm:$0xff] }
 0x22f   : > { %v1674_v22 = vld [vmem:[#allocation2 + $0x3a] sm:$0xff] }
 0x231   : > { %v1477_v11 = vld [vmem:[#allocation2 + $0x29] sm:$0xff]  ;;  %v1478_v28 = vld [vmem:[#allocation2 + $0x31] sm:$0xff]  ;;  %2470 = vmatpush3.bf16.msra.mxu1 %v2540_v52 }
 0x232   : > { %v1672_v14 = vld [vmem:[#allocation2 + $0x2a] sm:$0xff]  ;;  %v1482_v19 = vpack.c.bf16 %v1477_v11, %v1476_v34  ;;  %v1483_v13 = vpack.c.bf16 %v1479_v6, %v1478_v28  ;;  %v1673_v25 = vld [vmem:[#allocation2 + $0x32] sm:$0xff]  ;;  %2491 = vmatprep.subr.bf16.mxu1 %v2541_v24 }
 0x233   : > { %v1677_v23 = vpack.c.bf16 %v1672_v14, %v1671_v59  ;;  %v1678_v26 = vpack.c.bf16 %v1674_v22, %v1673_v25  ;;  %v2280_v14 = vld [vmem:[%s3112_s5 + $0x8] ss:$0 sm:$0xff] }
 0x234   : > { %2463 = vmatprep.mubr.msk.bf16.mxu1 %vm724_vm2, %v1482_v19 }
 0x235   : > { %2487 = vmatprep.mubr.msk.bf16.mxu0 %vm724_vm2, %v1677_v23  ;;  %2464 = vmatmul.mubr.msk.bf16.gmra.mxu1 %vm724_vm2, %v1483_v13 }
 0x236   : > { %2488 = vmatmul.mubr.msk.bf16.gmra.mxu0 %vm724_vm2, %v1678_v26  ;;  %2471 = vmatprep.mubr.msk.bf16.mxu1 %vm724_vm2, %v1464_v12 }
 0x23d   : > { %2472 = vmatmul.mubr.msk.bf16.vlgmr.msra.gmra.mxu1 %vm724_vm2, %v1465_v35 }
 0x23e   : > { %2475 = vmatprep.mubr.msk.bf16.mxu1 %vm724_vm2, %v1466_v37  ;;  %2492 = vmatpush3.bf16.msra.mxu1 %v2541_v24 }
 0x23f   : > { %2493 = vmatprep.subr.bf16.mxu1 %v2542_v18 }
 0x242   : > { %2494 = vmatpush3.bf16.msra.mxu1 %v2542_v18 }
 0x245   : > { %2476 = vmatmul.mubr.msk.bf16.gmra.mxu1 %vm724_vm2, %v1467_v39 }
 0x2ec   : > { %v2461_v31 = vpop.f32.mrf.mxu1 }
 0x2ed   : > { %v2485_v30 = vpop.f32.mrf.mxu0 }
 0x2ee   : > { %v1547_v15 = vpop.f32.mrf.mxu1 }
 0x2ef   : > { %v1742_v43 = vpop.f32.mrf.mxu0 }
 0x2f0   : > { %v2462_v33 = vpop.f32.mrf.mxu1 }
 0x2f1   : > { %v2486_v32 = vpop.f32.mrf.mxu0 }
 0x2f2   : > { %v1550_v41 = vpop.f32.mrf.mxu1 }
 0x2f3   : > { %v1745_v49 = vpop.f32.mrf.mxu0 }
 0x2f5   : > { %v2465_v44 = vpop.f32.mrf.mxu1 }
 0x2f6   : > { %v2489_v56 = vpop.f32.mrf.mxu0 }
 0x2f7   : > { %v1563_v45 = vpop.f32.mrf.mxu1 }
 0x2f8   : > { %v1758_v2 = vpop.f32.mrf.mxu0 }
 0x2f9   : > { %v2466_v38 = vpop.f32.mrf.mxu1 }
 0x2fa   : > { %v2490_v29 = vpop.f32.mrf.mxu0 }
 0x2fb   : > { %v1566_v16 = vpop.f32.mrf.mxu1 }
 0x2fc   : > { %v1761_v13 = vpop.f32.mrf.mxu0 }
 0x2fd   : > { %v2473_v50 = vpop.f32.mrf.mxu1 }
 0x2fe   : > { %v1645_v51 = vadd.f32 %v2473_v50, %v2461_v31 }
 0x2ff   : > { %v1636_v53 = vpop.f32.mrf.mxu1 }
 0x300   : > { %v1775_v42 = vadd.f32 %v2485_v30, %v1645_v51  ;;  %v1637_v20 = vadd.f32 %v1636_v53, %v1547_v15 }
 0x301   : > { %v2474_v60 = vpop.f32.mrf.mxu1 }
 0x302   : > { %v1773_v61 = vadd.f32 %v1742_v43, %v1637_v20  ;;  %v1648_v62 = vadd.f32 %v2474_v60, %v2462_v33  ;;  %v1788_v36 = vadd.f32 %v2278_v54, %v1775_v42  ;;  %v1925_v42 = vlaneseq }
 0x303   : > { %v1639_v63 = vpop.f32.mrf.mxu1 }
 0x304   : > { %v1786_v58 = vadd.f32 %v2278_v54, %v1773_v61  ;;  %v1776_v0 = vadd.f32 %v2486_v32, %v1648_v62  ;;  %v1640_v1 = vadd.f32 %v1639_v63, %v1550_v41  ;;  %v1796_v47 = vmax.f32 %v1788_v36, 0.0 }
 0x305   : > { %v2477_v21 = vpop.f32.mrf.mxu1 }
 0x306   : > { %v1794_v3 = vmax.f32 %v1786_v58, 0.0  ;;  %v1789_v4 = vadd.f32 %v2278_v54, %v1776_v0  ;;  %v1774_v5 = vadd.f32 %v1745_v49, %v1640_v1  ;;  %v1661_v55 = vadd.f32 %v2477_v21, %v2465_v44 }
 0x307   : > { %v1652_v8 = vpop.f32.mrf.mxu1  ;;  %v1809_v34 = vmul.f32 %v2279_v10, %v1796_v47 }
 0x308   : > { %v1797_v9 = vmax.f32 %v1789_v4, 0.0  ;;  %v1787_v17 = vadd.f32 %v2278_v54, %v1774_v5  ;;  %v1779_v40 = vadd.f32 %v2489_v56, %v1661_v55  ;;  %v1653_v48 = vadd.f32 %v1652_v8, %v1563_v45 }
 0x309   : > { %v2478_v57 = vpop.f32.mrf.mxu1  ;;  %v1807_v7 = vmul.f32 %v2279_v10, %v1794_v3  ;;  %v1822_v39 = vadd.f32 %v2280_v14, %v1809_v34 }
 0x30a   : > { %v1810_v46 = vmul.f32 %v2279_v10, %v1797_v9  ;;  %v1795_v27 = vmax.f32 %v1787_v17, 0.0  ;;  %v1664_v52 = vadd.f32 %v2478_v57, %v2466_v38  ;;  %v1792_v59 = vadd.f32 %v2278_v54, %v1779_v40 }
 0x30b   : > { %v1777_v6 = vadd.f32 %v1758_v2, %v1653_v48  ;;  %v1655_v11 = vpop.f32.mrf.mxu1  ;;  %v1820_v26 = vadd.f32 %v2280_v14, %v1807_v7 }
 0x30c   : > { %v1808_v28 = vmul.f32 %v2279_v10, %v1795_v27  ;;  %v1780_v19 = vadd.f32 %v2490_v29, %v1664_v52  ;;  %v1656_v23 = vadd.f32 %v1655_v11, %v1566_v16  ;;  %v1823_v25 = vadd.f32 %v2280_v14, %v1810_v46 }
 0x30d   : > { %v1790_v22 = vadd.f32 %v2278_v54, %v1777_v6  ;;  %v1800_v24 = vmax.f32 %v1792_v59, 0.0 }
 0x30e   : > { %v1821_v12 = vadd.f32 %v2280_v14, %v1808_v28  ;;  %v1793_v35 = vadd.f32 %v2278_v54, %v1780_v19  ;;  %v1778_v37 = vadd.f32 %v1761_v13, %v1656_v23  ;;  %v1829_v30 = vpack.c.bf16 %v1823_v25, %v1822_v39 }
 0x30f   : > { %v1798_v18 = vmax.f32 %v1790_v22, 0.0  ;;  %v1813_v45 = vmul.f32 %v2279_v10, %v1800_v24 }
 0x310   : > { %v1801_v31 = vmax.f32 %v1793_v35, 0.0  ;;  %v1791_v15 = vadd.f32 %v2278_v54, %v1778_v37  ;;  %v1828_v33 = vpack.c.bf16 %v1821_v12, %v1820_v26  ;;  %v1926_v54 = vshrl.u32 %v1925_v42, 7 }
 0x311   : > { %v1811_v41 = vmul.f32 %v2279_v10, %v1798_v18  ;;  %v1826_v50 = vadd.f32 %v2280_v14, %v1813_v45 }
 0x312   : > { %v1814_v43 = vmul.f32 %v2279_v10, %v1801_v31  ;;  %v1799_v44 = vmax.f32 %v1791_v15, 0.0  ;;  %2495 = vmatprep.mubr.msk.bf16.mxu1 %vm724_vm2, %v1828_v33  ;;  %v1928_v20 = vadd.s32 16, %v1926_v54  ;;  %v1929_v60 = vadd.s32 24, %v1926_v54 }
 0x313   : > { %2496 = vmatmul.mubr.msk.bf16.vlgmr.msra.gmra.mxu1 %vm724_vm2, %v1829_v30  ;;  %v1824_v16 = vadd.f32 %v2280_v14, %v1811_v41  ;;  %v1938_v61 = vand.u32 7, %v1926_v54  ;;  %v1927_v62 = vadd.s32 8, %v1926_v54  ;;  %v1932_v63 = vadd.s32 48, %v1926_v54  ;;  %v2287_v41 = vld [vmem:[%s3113_s6] ss:$0 sm:$0xff] }
 0x314   : > { %v1812_v32 = vmul.f32 %v2279_v10, %v1799_v44  ;;  %v1827_v38 = vadd.f32 %v2280_v14, %v1814_v43  ;;  %v1952_v56 = vand.u32 7, %v1928_v20  ;;  %v1959_v36 = vand.u32 7, %v1929_v60 }
 0x315   : > { %vm2030_vm5 = vcmp.lt.s32.totalorder %v1938_v61, 4  ;;  %v1945_v0 = vand.u32 7, %v1927_v62  ;;  %v1930_v1 = vadd.s32 32, %v1926_v54  ;;  %v1980_v3 = vand.u32 7, %v1932_v63 }
 0x316   : > { %v1825_v49 = vadd.f32 %v2280_v14, %v1812_v32  ;;  %v1831_v53 = vpack.c.bf16 %v1827_v38, %v1826_v50  ;;  %vm2032_vm3 = vcmp.lt.s32.totalorder %v1952_v56, 4  ;;  %vm2033_vm6 = vcmp.lt.s32.totalorder %v1959_v36, 4 }
 0x317   : > { %v1933_v4 = vadd.s32 56, %v1926_v54  ;;  %vm2031_vm7 = vcmp.lt.s32.totalorder %v1945_v0, 4  ;;  %v1966_v55 = vand.u32 7, %v1930_v1  ;;  %v1931_v8 = vadd.s32 40, %v1926_v54 }
 0x318   : > { %v1830_v51 = vpack.c.bf16 %v1825_v49, %v1824_v16  ;;  %vm2036_vm8 = vcmp.lt.s32.totalorder %v1980_v3, 4 }
 0x319   : > { %v1987_v17 = vand.u32 7, %v1933_v4  ;;  %vm2034_vm9 = vcmp.lt.s32.totalorder %v1966_v55, 4  ;;  %v1973_v48 = vand.u32 7, %v1931_v8 }
 0x31a   : > { %2499 = vmatprep.mubr.msk.bf16.mxu1 %vm724_vm2, %v1830_v51 }
 0x31b   : > { %2500 = vmatmul.mubr.msk.bf16.gmra.mxu1 %vm724_vm2, %v1831_v53  ;;  %vm2037_vm10 = vcmp.lt.s32.totalorder %v1987_v17, 4  ;;  %vm2035_vm11 = vcmp.lt.s32.totalorder %v1973_v48, 4 }
 0x3d3   : > { %v2497_v58 = vpop.f32.mrf.mxu1 }
 0x3d4   : > { %v2056_v2 = vsel %vm2032_vm3, %v2497_v58, -inf }
 0x3d5   : > { %2065 = vst.msk [vmem:[#allocation3 + $0x10] sm:$0xff] %vm2062_vm4, %v2056_v2  ;;  %v1894_v21 = vpop.f32.mrf.mxu1 }
 0x3d6   : > { %v2054_v5 = vsel %vm2030_vm5, %v1894_v21, -inf }
 0x3d7   : > { %2063 = vst.msk [vmem:[#allocation3] sm:$0xff] %vm2062_vm4, %v2054_v5  ;;  %v2498_v47 = vpop.f32.mrf.mxu1 }
 0x3d8   : > { %v2057_v10 = vsel %vm2033_vm6, %v2498_v47, -inf }
 0x3d9   : > { %2066 = vst.msk [vmem:[#allocation3 + $0x18] sm:$0xff] %vm2062_vm4, %v2057_v10  ;;  %v1897_v9 = vpop.f32.mrf.mxu1 }
 0x3da   : > { %v2055_v29 = vsel %vm2031_vm7, %v1897_v9, -inf }
 0x3db   : > { %2064 = vst.msk [vmem:[#allocation3 + $0x8] sm:$0xff] %vm2062_vm4, %v2055_v29  ;;  %v2501_v40 = vpop.f32.mrf.mxu1 }
 0x3dc   : > { %v2060_v57 = vsel %vm2036_vm8, %v2501_v40, -inf }
 0x3dd   : > { %2069 = vst.msk [vmem:[#allocation3 + $0x30] sm:$0xff] %vm2062_vm4, %v2060_v57  ;;  %v1910_v7 = vpop.f32.mrf.mxu1 }
 0x3de   : > { %v2058_v46 = vsel %vm2034_vm9, %v1910_v7, -inf }
 0x3df   : > { %2067 = vst.msk [vmem:[#allocation3 + $0x20] sm:$0xff] %vm2062_vm4, %v2058_v46  ;;  %v2502_v27 = vpop.f32.mrf.mxu1 }
 0x3e0   : > { %v2073_v52 = vld [vmem:[#allocation3 + $0x10] ss:$2 sm:$0xff]  ;;  %v2081_v34 = vld [vmem:[#allocation3 + $0x11] ss:$2 sm:$0xff]  ;;  %v2061_v59 = vsel %vm2037_vm10, %v2502_v27, -inf }
 0x3e1   : > { %v2087_v6 = vmax.f32 %v2073_v52, %v2081_v34  ;;  %2070 = vst.msk [vmem:[#allocation3 + $0x38] sm:$0xff] %vm2062_vm4, %v2061_v59  ;;  %v1913_v11 = vpop.f32.mrf.mxu1 }
 0x3e2   : > { %v2071_v14 = vld [vmem:[#allocation3] ss:$2 sm:$0xff]  ;;  %v2079_v28 = vld [vmem:[#allocation3 + $0x1] ss:$2 sm:$0xff]  ;;  %v2059_v19 = vsel %vm2035_vm11, %v1913_v11, -inf }
 0x3e3   : > { %v2086_v23 = vmax.f32 %v2071_v14, %v2079_v28  ;;  %2091 = vst.msk [vmem:[#allocation3 + $0x8] sm:$0xff] %vm2062_vm4, %v2087_v6  ;;  %2068 = vst.msk [vmem:[#allocation3 + $0x28] sm:$0xff] %vm2062_vm4, %v2059_v19 }
 0x3e5   : > { %2090 = vst.msk [vmem:[#allocation3] sm:$0xff] %vm2062_vm4, %v2086_v23 }
 0x3e8   : > { %v2077_v13 = vld [vmem:[#allocation3 + $0x30] ss:$2 sm:$0xff]  ;;  %v2085_v25 = vld [vmem:[#allocation3 + $0x31] ss:$2 sm:$0xff] }
 0x3e9   : > { %v2089_v22 = vmax.f32 %v2077_v13, %v2085_v25 }
 0x3ea   : > { %v2075_v26 = vld [vmem:[#allocation3 + $0x20] ss:$2 sm:$0xff]  ;;  %v2083_v12 = vld [vmem:[#allocation3 + $0x21] ss:$2 sm:$0xff] }
 0x3eb   : > { %2093 = vst.msk [vmem:[#allocation3 + $0x18] sm:$0xff] %vm2062_vm4, %v2089_v22  ;;  %v2088_v35 = vmax.f32 %v2075_v26, %v2083_v12 }
 0x3ec   : > { %v2094_v37 = vld [vmem:[#allocation3] ss:$2 sm:$0xff]  ;;  %v2096_v39 = vld [vmem:[#allocation3 + $0x1] ss:$2 sm:$0xff] }
 0x3ed   : > { %v2098_v24 = vmax.f32 %v2094_v37, %v2096_v39  ;;  %2092 = vst.msk [vmem:[#allocation3 + $0x10] sm:$0xff] %vm2062_vm4, %v2088_v35 }
 0x3ef   : > { %2100 = vst.msk [vmem:[#allocation3] sm:$0xff] %vm2062_vm4, %v2098_v24 }
 0x3f4   : > { %v2095_v18 = vld [vmem:[#allocation3 + $0x10] ss:$2 sm:$0xff]  ;;  %v2097_v31 = vld [vmem:[#allocation3 + $0x11] ss:$2 sm:$0xff] }
 0x3f5   : > { %v2099_v15 = vmax.f32 %v2095_v18, %v2097_v31 }
 0x3f7   : > { %2101 = vst.msk [vmem:[#allocation3 + $0x8] sm:$0xff] %vm2062_vm4, %v2099_v15 }
 0x3fe   : > { %v2102_v33 = vld [vmem:[#allocation3] ss:$2 sm:$0xff]  ;;  %v2103_v30 = vld [vmem:[#allocation3 + $0x1] ss:$2 sm:$0xff] }
 0x3ff   : > { %v2104_v43 = vmax.f32 %v2102_v33, %v2103_v30 }
 0x401   : > { %v2112_v44 = vadd.f32 %v2287_v41, %v2104_v43 }
 0x403   : > { %2113 = vst.msk [vmem:[%s278_s19] sm:$0xff] %vm2062_vm4, %v2112_v44 }
 0x404 PF: > { %s17_s24 = sadd.s32 1, %s2549_s24  }
 0x405   : > { %p14_p5 = scmp.ge.s32.totalorder %s17_s24, 4  }
 0x407   :  { %16 = sbr.rel (!%p14_p5) target bundleno = 1 (0x1), region = 120 }

</bundles_post_ra>
